<compile_context>
chip_gen: v6e
topology: v6e:2x2x1
jax: 0.10.0
libtpu: 0.0.40
codegen_flags: <defaults>
</compile_context>

<pallas_src>
import functools

import jax
import jax.numpy as jnp
from jax import lax
from jax.experimental import pallas as pl
from jax.experimental.pallas import tpu as pltpu


# ----------------------------------------------------------------------------
# Fused Pallas kernel
# ----------------------------------------------------------------------------
def _textcnn_fused_kernel(emb_ref, w_ref, b_ref, fcw_ref, fcb_ref, o_ref, x_scr,
                          *, branch_lo, num_filters, kmax, seg):
    """Shared im2col -> one fused multi-width conv matmul -> bias+ReLU ->
    masked global max-pool -> FC, all in one grid step.

      emb_ref : [Bt, Lp, E]        bf16, Lp = seg + kmax - 1, left pad = max_pad
      w_ref   : [kmax*E, n*F]      bf16 fused conv weight (zero taps outside branch)
      b_ref   : [1, n*F]           f32 fused conv bias
      fcw_ref : [n*F, C_PAD]       bf16
      fcb_ref : [1, C_PAD]         f32
      o_ref   : [Bt, C_PAD]        f32 (lane-dense 128-wide store)
      x_scr   : [Bt, seg, kmax*E]  bf16 im2col slab (fully rewritten every step)
    """
    Bt, _Lp, E = emb_ref.shape
    F_total = w_ref.shape[1]
    KE = kmax * E

    # --- shared im2col: ONE vectorized (whole-batch-tile) copy per tap.
    #     Every row/column of the slab is written each step, so no zero-init is
    #     needed and nothing relies on scratch persistence across grid steps.
    for j in range(kmax):
        x_scr[:, :, j * E:(j + 1) * E] = emb_ref[:, j:j + seg, :]

    # --- ONE MXU matmul for all conv widths; bf16 inputs, f32 accumulation.
    acc = jnp.dot(x_scr[...].reshape(Bt * seg, KE), w_ref[...],
                  preferred_element_type=jnp.float32)               # [Bt*seg, n*F]
    acc = acc.reshape(Bt, seg, F_total)

    # --- bias + ReLU (f32 epilogue: v5e-safe), kept in vregs (no y scratch).
    act = jnp.maximum(acc + b_ref[...], 0.0)

    # --- per-branch validity mask (row < Lo_branch) -> -inf, then ONE max-pool.
    row = lax.broadcasted_iota(jnp.int32, (seg, F_total), 0)
    col = lax.broadcasted_iota(jnp.int32, (seg, F_total), 1)
    lo = jnp.full((seg, F_total), branch_lo[0], jnp.int32)
    for bi in range(1, len(branch_lo)):
        lo = jnp.where(col >= bi * num_filters, branch_lo[bi], lo)
    masked = jnp.where((row < lo)[None, :, :], act, -jnp.inf)
    pooled = jnp.max(masked, axis=1)                                 # [Bt, n*F]

    # --- fused FC (dropout is identity in eval mode); lane-dense store.
    o_ref[...] = jnp.dot(pooled.astype(fcw_ref.dtype), fcw_ref[...],
                         preferred_element_type=jnp.float32) + fcb_ref[...]


# ----------------------------------------------------------------------------
# Wrapper
# ----------------------------------------------------------------------------
def textcnn_forward(tokens, params, ker_sizes, *, compute_dtype=jnp.bfloat16,
                    b_tile=None):
    emb_table = params["embedding"]
    B, L = tokens.shape
    E = emb_table.shape[1]
    F = params["conv_w"][0].shape[0]
    n = len(ker_sizes)
    C = params["fc_w"].shape[0]
    D = n * F
    C_PAD = 128                      # lane-dense FC output (sliced back to C below)
    kmax = max(ker_sizes)
    max_pad = max(k // 2 for k in ker_sizes)

    # Per-branch conv output lengths and tap offsets inside the shared kmax window.
    branch_lo, branch_off = [], []
    for k in ker_sizes:
        pad = k // 2
        branch_lo.append(L + 2 * pad - k + 1)
        branch_off.append(max_pad - pad)
    lo_max = max(branch_lo)
    seg = ((lo_max + 15) // 16) * 16          # bf16 sublane-aligned row count

    # Pad so every tap copy (emb[:, j:j+seg]) and every valid conv window is in-bounds.
    Lp = seg + kmax - 1
    right_pad = Lp - max_pad - L
    assert right_pad >= max_pad, (right_pad, max_pad)

    # TODO(synk): at production vocab/L, pull the gather + padding into the kernel
    # (PrefetchScalarGridSpec scalar-prefetched token ids + pl.ANY embedding table).
    emb = jnp.take(emb_table, tokens, axis=0)                         # [B, L, E]
    emb_pad = jnp.pad(emb, ((0, 0), (max_pad, right_pad), (0, 0))).astype(compute_dtype)

    # One fused conv weight [kmax*E, n*F]: branch bi's taps live at rows
    # (off_bi + t)*E + e, columns bi*F .. (bi+1)*F; zero elsewhere.
    w_shared = jnp.zeros((kmax * E, D), jnp.float32)
    b_shared = jnp.zeros((1, D), jnp.float32)
    for bi, (k, off, w, b) in enumerate(zip(ker_sizes, branch_off,
                                            params["conv_w"], params["conv_b"])):
        w_t = jnp.transpose(w, (2, 1, 0)).reshape(k * E, F)   # tap-major, ch-minor
        w_shared = w_shared.at[off * E:(off + k) * E, bi * F:(bi + 1) * F].set(w_t)
        b_shared = b_shared.at[0, bi * F:(bi + 1) * F].set(b)
    w_shared = w_shared.astype(compute_dtype)

    # Lane-dense FC: pad the class dim to a full 128-lane vreg width with zeros.
    fcw_pad = jnp.zeros((D, C_PAD), compute_dtype).at[:, :C].set(
        params["fc_w"].T.astype(compute_dtype))
    fcb_pad = jnp.zeros((1, C_PAD), jnp.float32).at[:, :C].set(
        params["fc_b"].astype(jnp.float32))

    if b_tile is None:
        # Big tiles amortize per-step overhead; cap for v7x's 64 MiB VMEM and keep
        # >= 2 grid steps so both v7x TensorCores get work when the batch allows it.
        b_tile = min(768, B // 2) if (B > 1 and B % 2 == 0) else B
    grid = (pl.cdiv(B, b_tile),)

    kern = functools.partial(_textcnn_fused_kernel,
                             branch_lo=tuple(branch_lo),
                             num_filters=F, kmax=kmax, seg=seg)

    in_specs = [
        pl.BlockSpec((b_tile, Lp, E), lambda i: (i, 0, 0)),
        pl.BlockSpec((kmax * E, D), lambda i: (0, 0)),
        pl.BlockSpec((1, D), lambda i: (0, 0)),
        pl.BlockSpec((D, C_PAD), lambda i: (0, 0)),
        pl.BlockSpec((1, C_PAD), lambda i: (0, 0)),
    ]

    out_padded = pl.pallas_call(
        kern,
        out_shape=jax.ShapeDtypeStruct((B, C_PAD), jnp.float32),
        grid=grid,
        in_specs=in_specs,
        out_specs=pl.BlockSpec((b_tile, C_PAD), lambda i: (i, 0)),
        scratch_shapes=[
            pltpu.VMEM((b_tile, seg, kmax * E), compute_dtype),   # im2col slab
        ],
        compiler_params=pltpu.CompilerParams(
            dimension_semantics=("parallel",),
            vmem_limit_bytes=28 * 1024 * 1024,   # v7x-safe scoped VMEM budget
        ),
    )(emb_pad, w_shared, b_shared, fcw_pad, fcb_pad)

    # TODO(synk): nn.Dropout is identity in eval mode; training-mode dropout not implemented.
    return out_padded[:, :C]


# ----------------------------------------------------------------------------
# Pure-JAX reference (same bf16 matmul-input quantization, f32 accumulation)
# ----------------------------------------------------------------------------
def textcnn_reference(tokens, params, ker_sizes, compute_dtype=jnp.bfloat16):
    emb = jnp.take(params["embedding"], tokens, axis=0)        # [B, L, E]
    feats = []
    for k, w, b in zip(ker_sizes, params["conv_w"], params["conv_b"]):
        pad = k // 2
        emb_p = jnp.pad(emb, ((0, 0), (pad, pad), (0, 0))).astype(compute_dtype)
        Lo = emb_p.shape[1] - k + 1
        cols = jnp.concatenate([emb_p[:, j:j + Lo, :] for j in range(k)], axis=-1)
        w_t = jnp.transpose(w, (2, 1, 0)).reshape(k * w.shape[1], w.shape[0])
        acc = jnp.einsum("blc,cf->blf", cols, w_t.astype(compute_dtype),
                         preferred_element_type=jnp.float32)
        acc = jnp.maximum(acc + b[None, None, :], 0.0)
        feats.append(jnp.max(acc, axis=1))
    out = jnp.concatenate(feats, axis=1)
    return jnp.dot(out.astype(compute_dtype),
                   params["fc_w"].T.astype(compute_dtype),
                   preferred_element_type=jnp.float32) + params["fc_b"][None, :]


# ----------------------------------------------------------------------------
# Main
# ----------------------------------------------------------------------------
if __name__ == "__main__":
    vocab_size, embed_dim, num_filters = 50, 32, 16
    ker_sizes = (3, 4, 5)
    B, L = 16, 16          # default b_tile -> 8, i.e. a 2-step parallel batch grid

    key = jax.random.PRNGKey(0)
    k_emb, k_cw, k_cb, k_fw, k_fb, k_tok = jax.random.split(key, 6)

    emb_table = jax.random.normal(k_emb, (vocab_size, embed_dim), jnp.float32) * 0.1
    emb_table = emb_table.at[0].set(0.0)  # padding_idx=0

    conv_w, conv_b = [], []
    for i, k in enumerate(ker_sizes):
        conv_w.append(jax.random.normal(jax.random.fold_in(k_cw, i),
                                        (num_filters, embed_dim, k), jnp.float32) * 0.1)
        conv_b.append(jax.random.normal(jax.random.fold_in(k_cb, i),
                                        (num_filters,), jnp.float32) * 0.1)

    fc_w = jax.random.normal(k_fw, (2, num_filters * len(ker_sizes)), jnp.float32) * 0.1
    fc_b = jax.random.normal(k_fb, (2,), jnp.float32) * 0.1

    params = {
        "embedding": emb_table,
        "conv_w": conv_w,
        "conv_b": conv_b,
        "fc_w": fc_w,
        "fc_b": fc_b,
    }

    tokens = jax.random.randint(k_tok, (B, L), 0, vocab_size, jnp.int32)

    fwd = jax.jit(functools.partial(textcnn_forward, ker_sizes=ker_sizes))
    out = jax.block_until_ready(fwd(tokens, params))

    ref = textcnn_reference(tokens, params, ker_sizes)
    assert out.shape == (B, 2), out.shape
    assert jnp.allclose(out, ref, atol=5e-3, rtol=5e-3), (out, ref)

    print("KERNEL_OK")
</pallas_src>

<mosaic_0001>
module attributes {stable_mosaic.version = 11 : i64} {
  func.func @_textcnn_fused_kernel(%arg0: i32, %arg1: memref<8x36x32xbf16, #tpu.memory_space<vmem>>, %arg2: memref<160x48xbf16, #tpu.memory_space<vmem>>, %arg3: memref<1x48xf32, #tpu.memory_space<vmem>>, %arg4: memref<48x128xbf16, #tpu.memory_space<vmem>>, %arg5: memref<1x128xf32, #tpu.memory_space<vmem>>, %arg6: memref<8x128xf32, #tpu.memory_space<vmem>>, %arg7: memref<8x32x160xbf16, #tpu.memory_space<vmem>>) attributes {dimension_semantics = [#tpu.dimension_semantics<parallel>], iteration_bounds = array<i64: 2>, scalar_prefetch = 0 : i64, scratch_operands = 1 : i64, tpu.core_type = #tpu.core_type<tc>, window_params = [{transform_indices = @transform_0, window_bounds = array<i64: 8, 36, 32>}, {pipeline_mode = #tpu.pipeline_mode<synchronous>, transform_indices = @transform_1, window_bounds = array<i64: 160, 48>}, {pipeline_mode = #tpu.pipeline_mode<synchronous>, transform_indices = @transform_2, window_bounds = array<i64: 1, 48>}, {pipeline_mode = #tpu.pipeline_mode<synchronous>, transform_indices = @transform_3, window_bounds = array<i64: 48, 128>}, {pipeline_mode = #tpu.pipeline_mode<synchronous>, transform_indices = @transform_4, window_bounds = array<i64: 1, 128>}, {transform_indices = @transform_5, window_bounds = array<i64: 8, 128>}]} {
    %c0 = arith.constant 0 : index
    %c0_0 = arith.constant 0 : index
    %c0_1 = arith.constant 0 : index
    %0 = vector.load %arg1[%c0, %c0_0, %c0_1] : memref<8x36x32xbf16, #tpu.memory_space<vmem>>, vector<8x32x32xbf16>
    %c0_2 = arith.constant 0 : index
    %c0_3 = arith.constant 0 : index
    %c0_4 = arith.constant 0 : index
    %1 = vector.load %arg7[%c0_2, %c0_3, %c0_4] : memref<8x32x160xbf16, #tpu.memory_space<vmem>>, vector<8x32x32xbf16>
    tpu.vector_store %arg7[%c0_2, %c0_3, %c0_4], %0 {strides = array<i32>} : memref<8x32x160xbf16, #tpu.memory_space<vmem>>, vector<8x32x32xbf16>,
    %c0_5 = arith.constant 0 : index
    %c1 = arith.constant 1 : index
    %c0_6 = arith.constant 0 : index
    %2 = vector.load %arg1[%c0_5, %c1, %c0_6] : memref<8x36x32xbf16, #tpu.memory_space<vmem>>, vector<8x32x32xbf16>
    %c0_7 = arith.constant 0 : index
    %c0_8 = arith.constant 0 : index
    %c32 = arith.constant 32 : index
    %3 = vector.load %arg7[%c0_7, %c0_8, %c32] : memref<8x32x160xbf16, #tpu.memory_space<vmem>>, vector<8x32x32xbf16>
    tpu.vector_store %arg7[%c0_7, %c0_8, %c32], %2 {strides = array<i32>} : memref<8x32x160xbf16, #tpu.memory_space<vmem>>, vector<8x32x32xbf16>,
    %c0_9 = arith.constant 0 : index
    %c2 = arith.constant 2 : index
    %c0_10 = arith.constant 0 : index
    %4 = vector.load %arg1[%c0_9, %c2, %c0_10] : memref<8x36x32xbf16, #tpu.memory_space<vmem>>, vector<8x32x32xbf16>
    %c0_11 = arith.constant 0 : index
    %c0_12 = arith.constant 0 : index
    %c64 = arith.constant 64 : index
    %5 = vector.load %arg7[%c0_11, %c0_12, %c64] : memref<8x32x160xbf16, #tpu.memory_space<vmem>>, vector<8x32x32xbf16>
    tpu.vector_store %arg7[%c0_11, %c0_12, %c64], %4 {strides = array<i32>} : memref<8x32x160xbf16, #tpu.memory_space<vmem>>, vector<8x32x32xbf16>,
    %c0_13 = arith.constant 0 : index
    %c3 = arith.constant 3 : index
    %c0_14 = arith.constant 0 : index
    %6 = vector.load %arg1[%c0_13, %c3, %c0_14] : memref<8x36x32xbf16, #tpu.memory_space<vmem>>, vector<8x32x32xbf16>
    %c0_15 = arith.constant 0 : index
    %c0_16 = arith.constant 0 : index
    %c96 = arith.constant 96 : index
    %7 = vector.load %arg7[%c0_15, %c0_16, %c96] : memref<8x32x160xbf16, #tpu.memory_space<vmem>>, vector<8x32x32xbf16>
    tpu.vector_store %arg7[%c0_15, %c0_16, %c96], %6 {strides = array<i32>} : memref<8x32x160xbf16, #tpu.memory_space<vmem>>, vector<8x32x32xbf16>,
    %c0_17 = arith.constant 0 : index
    %c4 = arith.constant 4 : index
    %c0_18 = arith.constant 0 : index
    %8 = vector.load %arg1[%c0_17, %c4, %c0_18] : memref<8x36x32xbf16, #tpu.memory_space<vmem>>, vector<8x32x32xbf16>
    %c0_19 = arith.constant 0 : index
    %c0_20 = arith.constant 0 : index
    %c128 = arith.constant 128 : index
    %9 = vector.load %arg7[%c0_19, %c0_20, %c128] : memref<8x32x160xbf16, #tpu.memory_space<vmem>>, vector<8x32x32xbf16>
    tpu.vector_store %arg7[%c0_19, %c0_20, %c128], %8 {strides = array<i32>} : memref<8x32x160xbf16, #tpu.memory_space<vmem>>, vector<8x32x32xbf16>,
    %c0_21 = arith.constant 0 : index
    %c0_22 = arith.constant 0 : index
    %c0_23 = arith.constant 0 : index
    %10 = vector.load %arg7[%c0_21, %c0_22, %c0_23] : memref<8x32x160xbf16, #tpu.memory_space<vmem>>, vector<8x32x160xbf16>
    %11 = vector.shape_cast %10 : vector<8x32x160xbf16> to vector<256x160xbf16>
    %c0_24 = arith.constant 0 : index
    %c0_25 = arith.constant 0 : index
    %12 = vector.load %arg2[%c0_24, %c0_25] : memref<160x48xbf16, #tpu.memory_space<vmem>>, vector<160x48xbf16>
    %cst = arith.constant dense<0.000000e+00> : vector<256x48xf32>
    %13 = tpu.matmul %11, %12, %cst {dimension_numbers = #tpu.dot_dimension_numbers<[1], [0], [0], [1], [0, 0, 1, 1], [], []>} : vector<256x160xbf16>, vector<160x48xbf16>, vector<256x48xf32> -> vector<256x48xf32>
    %14 = vector.shape_cast %13 : vector<256x48xf32> to vector<8x32x48xf32>
    %c0_26 = arith.constant 0 : index
    %c0_27 = arith.constant 0 : index
    %15 = vector.load %arg3[%c0_26, %c0_27] : memref<1x48xf32, #tpu.memory_space<vmem>>, vector<1x48xf32>
    %16 = vector.shape_cast %15 : vector<1x48xf32> to vector<1x1x48xf32>
    %17 = vector.broadcast %16 : vector<1x1x48xf32> to vector<8x32x48xf32>
    %18 = arith.addf %14, %17 : vector<8x32x48xf32>
    %cst_28 = arith.constant 0.000000e+00 : f32
    %19 = vector.broadcast %cst_28 : f32 to vector<8x32x48xf32>
    %20 = arith.maximumf %18, %19 : vector<8x32x48xf32>
    %21 = tpu.iota {dimensions = array<i32: 0>} : vector<32x48xi32>
    %22 = tpu.iota {dimensions = array<i32: 1>} : vector<32x48xi32>
    %c16_i32 = arith.constant 16 : i32
    %23 = vector.broadcast %c16_i32 : i32 to vector<32x48xi32>
    %c16_i32_29 = arith.constant 16 : i32
    %24 = vector.broadcast %c16_i32_29 : i32 to vector<32x48xi32>
    %25 = arith.cmpi sge, %22, %24 : vector<32x48xi32>
    %c17_i32 = arith.constant 17 : i32
    %26 = vector.broadcast %c17_i32 : i32 to vector<32x48xi32>
    %27 = arith.select %25, %26, %23 : vector<32x48xi1>, vector<32x48xi32>
    %c32_i32 = arith.constant 32 : i32
    %28 = vector.broadcast %c32_i32 : i32 to vector<32x48xi32>
    %29 = arith.cmpi sge, %22, %28 : vector<32x48xi32>
    %c16_i32_30 = arith.constant 16 : i32
    %30 = vector.broadcast %c16_i32_30 : i32 to vector<32x48xi32>
    %31 = arith.select %29, %30, %27 : vector<32x48xi1>, vector<32x48xi32>
    %32 = arith.cmpi slt, %21, %31 : vector<32x48xi32>
    %33 = vector.shape_cast %32 : vector<32x48xi1> to vector<1x32x48xi1>
    %cst_31 = arith.constant 0xFF800000 : f32
    %34 = vector.shape_cast %33 : vector<1x32x48xi1> to vector<1x32x48xi1>
    %35 = vector.broadcast %34 : vector<1x32x48xi1> to vector<8x32x48xi1>
    %36 = vector.broadcast %cst_31 : f32 to vector<8x32x48xf32>
    %37 = arith.select %35, %20, %36 : vector<8x32x48xi1>, vector<8x32x48xf32>
    %cst_32 = arith.constant dense<0xFF800000> : vector<8x48xf32>
    %38 = vector.multi_reduction <maximumf>, %37, %cst_32 [1] : vector<8x32x48xf32> to vector<8x48xf32>
    %39 = arith.truncf %38 : vector<8x48xf32> to vector<8x48xbf16>
    %c0_33 = arith.constant 0 : index
    %c0_34 = arith.constant 0 : index
    %40 = vector.load %arg4[%c0_33, %c0_34] : memref<48x128xbf16, #tpu.memory_space<vmem>>, vector<48x128xbf16>
    %cst_35 = arith.constant dense<0.000000e+00> : vector<8x128xf32>
    %41 = tpu.matmul %39, %40, %cst_35 {dimension_numbers = #tpu.dot_dimension_numbers<[1], [0], [0], [1], [0, 0, 1, 1], [], []>} : vector<8x48xbf16>, vector<48x128xbf16>, vector<8x128xf32> -> vector<8x128xf32>
    %c0_36 = arith.constant 0 : index
    %c0_37 = arith.constant 0 : index
    %42 = vector.load %arg5[%c0_36, %c0_37] : memref<1x128xf32, #tpu.memory_space<vmem>>, vector<1x128xf32>
    %43 = vector.broadcast %42 : vector<1x128xf32> to vector<8x128xf32>
    %44 = arith.addf %41, %43 : vector<8x128xf32>
    %c0_38 = arith.constant 0 : index
    %c0_39 = arith.constant 0 : index
    %45 = vector.load %arg6[%c0_38, %c0_39] : memref<8x128xf32, #tpu.memory_space<vmem>>, vector<8x128xf32>
    tpu.vector_store %arg6[%c0_38, %c0_39], %44 {strides = array<i32>} : memref<8x128xf32, #tpu.memory_space<vmem>>, vector<8x128xf32>,
    return
  }
  func.func @transform_0(%arg0: i32) -> (i32, i32, i32) {
    %c0_i32 = arith.constant 0 : i32
    %c0_i32_0 = arith.constant 0 : i32
    %c0_i32_1 = arith.constant 0 : i32
    return %arg0, %c0_i32, %c0_i32_0 : i32, i32, i32
  }
  func.func @transform_1(%arg0: i32) -> (i32, i32) {
    %c0_i32 = arith.constant 0 : i32
    %c0_i32_0 = arith.constant 0 : i32
    %c0_i32_1 = arith.constant 0 : i32
    return %c0_i32, %c0_i32_0 : i32, i32
  }
  func.func @transform_2(%arg0: i32) -> (i32, i32) {
    %c0_i32 = arith.constant 0 : i32
    %c0_i32_0 = arith.constant 0 : i32
    %c0_i32_1 = arith.constant 0 : i32
    return %c0_i32, %c0_i32_0 : i32, i32
  }
  func.func @transform_3(%arg0: i32) -> (i32, i32) {
    %c0_i32 = arith.constant 0 : i32
    %c0_i32_0 = arith.constant 0 : i32
    %c0_i32_1 = arith.constant 0 : i32
    return %c0_i32, %c0_i32_0 : i32, i32
  }
  func.func @transform_4(%arg0: i32) -> (i32, i32) {
    %c0_i32 = arith.constant 0 : i32
    %c0_i32_0 = arith.constant 0 : i32
    %c0_i32_1 = arith.constant 0 : i32
    return %c0_i32, %c0_i32_0 : i32, i32
  }
  func.func @transform_5(%arg0: i32) -> (i32, i32) {
    %c0_i32 = arith.constant 0 : i32
    %c0_i32_0 = arith.constant 0 : i32
    return %arg0, %c0_i32 : i32, i32
  }
}

</mosaic_0001>

<bundles_post_ra>
// kernel: textcnn_forward.1
= control target key start
LH: loop header
LB: loop body
LE: loop exit
PB: predicated region body
PF: predicated region fallthrough
CT: control target
= control target key end

     0   :  { %s3038_s18 = smov 0   ;;  %s4587_s0 = inlined_call_operand.vmem [shape: bf16[16,36,32], index: 0, kind: input, shape index: {}]   ;;  %s4588_s1 = inlined_call_operand.vmem [shape: bf16[160,48], index: 1, kind: input, shape index: {}]   ;;  %s4589_s2 = inlined_call_operand.vmem [shape: f32[1,48], index: 2, kind: input, shape index: {}]   ;;  %s4590_s3 = inlined_call_operand.vmem [shape: bf16[48,128], index: 3, kind: input, shape index: {}]   ;;  %s4591_s4 = inlined_call_operand.vmem [shape: f32[1,128], index: 4, kind: input, shape index: {}]   ;;  %s4592_s5 = inlined_call_operand.vmem [shape: f32[16,128], index: 5, kind: output, shape index: {}]  }
   0x1 LB: > { %s3044_s19 = sadd.s32 4294967295, %s2999_s18   ;;  %p2809_p0 = scmp.ge.s32.totalorder %s2999_s18, 1  ;;  %s2999_s18 = sphi %s3038_s18, %s15_s18  }
   0x2   : > { %p189_p1 = scmp.lt.s32.totalorder %s2999_s18, 3 }
   0x4   : > { %p190_p2 = pnand %p2809_p0, %p189_p1 }
   0x5   : > { %s2810_s20 = sshll.u32 (!%p190_p2), %s3044_s19, 3  ;;  %s3002_s8 = smov (!%p190_p2), 64  }
   0x6   : > { %193 = sbr.rel (%p190_p2) target bundleno = 766 (0x2fe), region = 40  ;;  %p218_p3 = scmp.lt.s32.totalorder (!%p190_p2), %s2810_s20, 15 }
   0x7   : > { %s3003_s11 = smov (!%p190_p2), 32   ;;  %s3004_s14 = smov (!%p190_p2), 96  }
   0x8   : > { %p224_p4 = scmp.lt.s32.totalorder (!%p190_p2), %s3044_s19, 1 }
   0xb   : > { %s4610_s20 = smov (!%p218_p3, %s2810_s20), 15  ;;  %vm898_vm0 = vcmask 1042432   ;;  %v3001_v0 = vmov 0   ;;  %v2945_v1 = vld [vmem:[%s4588_s1 + $0x38] sm:$0xff]   ;;  %vm899_vm1 = vcmask 1046532   ;;  %v2946_v2 = vld [vmem:[%s4588_s1 + $0x30] sm:$0xff]  }
   0xc   : > { %2246 = vmatprep.subr.bf16.mxu0 %v3001_v0  ;;  %2909 = vmatprep.subr.bf16.mxu1 %v3001_v0  ;;  %s2929_s23 = smul.u32 20, %s4610_s20  ;;  %vm334_vm2 = vsmask.f32 3328  ;;  %vm3064_vm3 = vmor %vm898_vm0, %vm899_vm1  ;;  %vm335_vm4 = vsmask.f32 7440  ;;  %v2947_v11 = vld [vmem:[%s4588_s1 + $0x28] sm:$0xff]  }
   0xd   : > { %2247 = vmatpush1.bf16.msra.mxu0 %v2945_v1  ;;  %2919 = vmatpush1.bf16.msra.mxu1 %v2945_v1  ;;  %vm1174_vm5 = vsmask.f32 2304  ;;  %vm1175_vm6 = vsmask.f32 6416  ;;  %v2948_v20 = vld [vmem:[%s4588_s1 + $0x20] sm:$0xff]   ;;  %vm3109_vm7 = vmor %vm334_vm2, %vm335_vm4  ;;  %v2949_v51 = vld [vmem:[%s4588_s1 + $0x18] sm:$0xff]  }
   0xe   : > { %2248 = vmatprep.subr.bf16.mxu0 %v3001_v0  ;;  %2910 = vmatprep.subr.bf16.mxu1 %v3001_v0  ;;  %s3062_s28 = scalar_lea.vmem %s4587_s0, %s2929_s23  ;;  %vm3130_vm8 = vmor %vm1174_vm5, %vm1175_vm6  ;;  %vm261_vm9 = vcmask 257024   ;;  %vm1770_vm10 = vcmask 1041408   ;;  %vm1771_vm11 = vcmask 1045508   ;;  %vm785_vm13 = vcmask 519424   ;;  %s4612_s19 = smov (!%p224_p4, %s3044_s19), 1 }
   0xf   : > { %v818_v4 = vld [vmem:[%s3062_s28] sm:$0xe]  ;;  %v819_v5 = vld [vmem:[%s3062_s28 + $0x4] sm:$0xf]  ;;  %v820_v6 = vld [vmem:[%s3062_s28 + $0x8] sm:$0xf] }
  0x10   : > { %v2813_v7 = vrot.slane %v818_v4, 9  ;;  %v903_v8 = vrot.slane %v819_v5, 5  ;;  %v821_v9 = vld [vmem:[%s3062_s28 + $0xc] sm:$0xf]  ;;  %v906_v10 = vrot.slane %v820_v6, 5  ;;  %vm3659_vm12 = vmor %vm1770_vm10, %vm1771_vm11  ;;  %vm1101_vm14 = vcmask 781824  }
  0x11   : > { %2249 = vmatpush1.bf16.msra.mxu0 %v2946_v2  ;;  %2920 = vmatpush1.bf16.msra.mxu1 %v2946_v2  ;;  %v909_v12 = vrot.slane %v821_v9, 5  ;;  %v294_v13 = vld [vmem:[%s3062_s28] sm:$0xf]  ;;  %v295_v14 = vld [vmem:[%s3062_s28 + $0x4] sm:$0xf]  ;;  %vm1657_vm15 = vcmask 1044224  }
  0x12   : > { %2250 = vmatprep.subr.bf16.mxu0 %v3001_v0  ;;  %2911 = vmatprep.subr.bf16.mxu1 %v3001_v0  ;;  %v904_v15 = vsel %vm3064_vm3, %v2813_v7, %v903_v8  ;;  %v908_v16 = vrot.slane %v906_v10, 4  ;;  %v905_v17 = vrot.slane %v903_v8, 4  ;;  %v338_v18 = vshrl.u32 %v294_v13, 16  ;;  %v822_v19 = vld [vmem:[%s3062_s28 + $0x10] sm:$0x1] }
  0x13   : > { %1005 = vrot.lane.b32.xlu1 %v904_v15, %s3002_s8  ;;  %v341_v21 = vshll.u32 %v294_v13, 16  ;;  %v347_v22 = vshll.u32 %v295_v14, 16  ;;  %v351_v23 = vshrl.u32 %v295_v14, 16  ;;  %v911_v24 = vrot.slane %v909_v12, 4  ;;  %v3087_v25 = vld [vmem:[%s3062_s28 + $0x8] sm:$0xf] }
  0x14   : > { %v910_v26 = vsel %vm3064_vm3, %v908_v16, %v909_v12  ;;  %v907_v27 = vsel %vm3064_vm3, %v905_v17, %v906_v10  ;;  %v340_v28 = vrot.slane %v338_v18, 4  ;;  %v912_v29 = vrot.slane %v822_v19, 5  ;;  %v1135_v30 = vld [vmem:[%s3062_s28 + $0x4] sm:$0xf]  ;;  %v1136_v31 = vld [vmem:[%s3062_s28 + $0x8] sm:$0xf] }
  0x15   : > { %2251 = vmatpush1.bf16.msra.mxu0 %v2947_v11  ;;  %2921 = vmatpush1.bf16.msra.mxu1 %v2947_v11  ;;  %v343_v32 = vrot.slane %v341_v21, 5  ;;  %v349_v33 = vrot.slane %v347_v22, 5  ;;  %v353_v34 = vrot.slane %v351_v23, 4  ;;  %v357_v35 = vshll.u32 %v3087_v25, 16  ;;  %v1134_v36 = vld [vmem:[%s3062_s28] sm:$0xe] }
  0x16   : > { %1009 = vrot.lane.b32.xlu0 %v910_v26, %s3002_s8  ;;  %2252 = vmatprep.subr.bf16.mxu0 %v3001_v0  ;;  %v913_v37 = vsel %vm3064_vm3, %v911_v24, %v912_v29  ;;  %v361_v38 = vshrl.u32 %v3087_v25, 16  ;;  %v1187_v39 = vshrl.u32 %v1135_v30, 16  ;;  %v1190_v40 = vshll.u32 %v1135_v30, 16  ;;  %v297_v45 = vld [vmem:[%s3062_s28 + $0xc] sm:$0xf]  ;;  %v2950_v10 = vld [vmem:[%s4588_s1 + $0x10] sm:$0xff]  }
  0x17   : > { %2912 = vmatprep.subr.bf16.mxu1 %v3001_v0  ;;  %1007 = vrot.lane.b32.xlu1 %v907_v27, %s3002_s8  ;;  %v344_v41 = vor.u32 %v343_v32, %v340_v28  ;;  %v354_v42 = vor.u32 %v353_v34, %v349_v33  ;;  %v3104_v43 = vrot.slane %v357_v35, 5  ;;  %v1197_v44 = vshrl.u32 %v1136_v31, 16  ;;  %v298_v56 = vld [vmem:[%s3062_s28 + $0x10] sm:$0x1]  ;;  %v1137_v61 = vld [vmem:[%s3062_s28 + $0xc] sm:$0xf] }
  0x18   : > { %v1189_v47 = vrot.slane %v1187_v39, 5  ;;  %v1192_v48 = vrot.slane %v1190_v40, 6  ;;  %v1200_v49 = vshll.u32 %v1136_v31, 16  ;;  %v1178_v50 = vshrl.u32 %v1134_v36, 16  ;;  %v1138_v5 = vld [vmem:[%s3062_s28 + $0x10] sm:$0x3] }
  0x19   : > { %2253 = vmatpush1.bf16.msra.mxu0 %v2948_v20  ;;  %2922 = vmatpush1.bf16.msra.mxu1 %v2948_v20  ;;  %v345_v52 = vrot.slane %v344_v41, 4  ;;  %v355_v53 = vrot.slane %v354_v42, 4  ;;  %v1199_v54 = vrot.slane %v1197_v44, 5  ;;  %v1181_v55 = vshll.u32 %v1134_v36, 16  ;;  %v300_v19 = vld [vmem:[%s3062_s28 + $0x18] sm:$0xf] }
  0x1a   : > { %2254 = vmatprep.subr.bf16.mxu0 %v3001_v0  ;;  %2913 = vmatprep.subr.bf16.mxu1 %v3001_v0  ;;  %v3119_v57 = vor.u32 %v1192_v48, %v1189_v47  ;;  %v1202_v58 = vrot.slane %v1200_v49, 6  ;;  %v1180_v59 = vrot.slane %v1178_v50, 5  ;;  %v367_v60 = vshll.u32 %v297_v45, 16  ;;  %v3151_v24 = vld [vmem:[%s3062_s28 + $0x1c] sm:$0xf]  ;;  %v2951_v34 = vld [vmem:[%s4588_s1 + $0x8] sm:$0xff]  }
  0x1b   : > { %v350_v62 = vsel %vm3109_vm7, %v345_v52, %v349_v33  ;;  %1011 = vrot.lane.b32.xlu1 %v913_v37, %s3002_s8  ;;  %v360_v63 = vsel %vm3109_vm7, %v355_v53, %v3104_v43  ;;  %v1183_v2 = vrot.slane %v1181_v55, 6  ;;  %v371_v4 = vshrl.u32 %v297_v45, 16  ;;  %v299_v33 = vld [vmem:[%s3062_s28 + $0x14] sm:$0xf]  ;;  %v3164_v39 = vld [vmem:[%s3062_s28 + $0x18] sm:$0xf] }
  0x1c   : > { %689 = vrot.lane.b32.xlu0 %v350_v62, %s3003_s11  ;;  %v1195_v6 = vrot.slane %v3119_v57, 4  ;;  %v1203_v7 = vor.u32 %v1202_v58, %v1199_v54  ;;  %v3137_v8 = vrot.slane %v367_v60, 5  ;;  %v377_v9 = vshll.u32 %v298_v56, 16  ;;  %v3178_v44 = vld [vmem:[%s3062_s28 + $0x14] sm:$0xe]  ;;  %v2952_v56 = vld [vmem:[%s4588_s1] sm:$0xff]  }
  0x1d   : > { %2255 = vmatpush1.bf16.msra.mxu0 %v2949_v51  ;;  %v1184_v11 = vor.u32 %v1183_v2, %v1180_v59  ;;  %v373_v12 = vrot.slane %v371_v4, 4  ;;  %v363_v13 = vrot.slane %v361_v38, 4  ;;  %v1207_v14 = vshrl.u32 %v1137_v61, 16  ;;  %2923 = vmatpush1.bf16.msra.mxu1 %v2949_v51  ;;  %v1140_v50 = vld [vmem:[%s3062_s28 + $0x18] sm:$0xf] }
  0x1e   : > { %2256 = vmatprep.subr.bf16.mxu0 %v3001_v0  ;;  %v1204_v15 = vsel %vm3130_vm8, %v1195_v6, %v1203_v7  ;;  %v379_v16 = vrot.slane %v377_v9, 5  ;;  %v1210_v17 = vshll.u32 %v1137_v61, 16  ;;  %v1217_v18 = vshrl.u32 %v1138_v5, 16  ;;  %2914 = vmatprep.subr.bf16.mxu1 %v3001_v0  ;;  %v1141_v55 = vld [vmem:[%s3062_s28 + $0x1c] sm:$0xf] }
  0x1f   : > { %1563 = vrot.lane.b32.xlu1 %v1204_v15, %s3004_s14  ;;  %v1185_v20 = vrot.slane %v1184_v11, 4  ;;  %v374_v21 = vor.u32 %v373_v12, %v3137_v8  ;;  %v364_v22 = vor.u32 %v363_v13, %v3104_v43  ;;  %v1209_v23 = vrot.slane %v1207_v14, 5  ;;  %v3175_v43 = vld [vmem:[%s3062_s28 + $0x1c] sm:$0xf]  ;;  %v1139_v4 = vld [vmem:[%s3062_s28 + $0x14] sm:$0xe] }
  0x20   : > { %691 = vrot.lane.b32.xlu0 %v360_v63, %s3003_s11  ;;  %v1212_v25 = vrot.slane %v1210_v17, 6  ;;  %v1219_v26 = vrot.slane %v1217_v18, 5  ;;  %v1220_v27 = vshll.u32 %v1138_v5, 16  ;;  %v1205_v28 = vrot.slane %v1203_v7, 4  ;;  %v302_v9 = vld [vmem:[%s3062_s28 + $0x20] sm:$0xf] }
  0x21   : > { %2257 = vmatpush1.bf16.msra.mxu0 %v2950_v10  ;;  %v1194_v29 = vsel %vm3130_vm8, %v1185_v20, %v3119_v57  ;;  %v375_v30 = vrot.slane %v374_v21, 4  ;;  %v365_v31 = vrot.slane %v364_v22, 4  ;;  %v391_v32 = vshll.u32 %v300_v19, 16  ;;  %2924 = vmatpush1.bf16.msra.mxu1 %v2950_v10  ;;  %v303_v14 = vld [vmem:[%s3062_s28 + $0x24] sm:$0x1]  ;;  %v2953_v15 = vld [vmem:[%s4588_s1 + $0x48] sm:$0xff]  }
  0x22   : > { %2258 = vmatprep.subr.bf16.mxu0 %v3001_v0  ;;  %v1213_v35 = vor.u32 %v1212_v25, %v1209_v23  ;;  %v1222_v36 = vrot.slane %v1220_v27, 6  ;;  %v395_v37 = vshrl.u32 %v300_v19, 16  ;;  %v401_v38 = vshll.u32 %v3151_v24, 16  ;;  %2915 = vmatprep.subr.bf16.mxu1 %v3001_v0 }
  0x23   : > { %v380_v40 = vsel %vm3109_vm7, %v375_v30, %v379_v16  ;;  %v370_v41 = vsel %vm3109_vm7, %v365_v31, %v3137_v8  ;;  %v3172_v42 = vrot.slane %v391_v32, 5  ;;  %v405_v49 = vshrl.u32 %v3151_v24, 16  ;;  %v2954_v30 = vld [vmem:[%s4588_s1 + $0x40] sm:$0xff]  }
  0x24   : > { %1561 = vrot.lane.b32.xlu0 %v1194_v29, %s3004_s14  ;;  %695 = vrot.lane.b32.xlu1 %v380_v40, %s3003_s11  ;;  %v1215_v45 = vrot.slane %v1213_v35, 4  ;;  %v1223_v47 = vor.u32 %v1222_v36, %v1219_v26  ;;  %v397_v48 = vrot.slane %v395_v37, 4  ;;  %v1214_v51 = vsel %vm3130_vm8, %v1205_v28, %v1213_v35  ;;  %v317_v29 = vld [vmem:[%s3062_s28 + $0x5c] sm:$0xf]  ;;  %v318_v35 = vld [vmem:[%s3062_s28 + $0x60] sm:$0x1] }
  0x25   : > { %v382_v52 = vshrl.u32 %v299_v33, 16  ;;  %v385_v53 = vshll.u32 %v299_v33, 16  ;;  %v916_v54 = vrot.slane %v3164_v39, 5  ;;  %2259 = vmatpush1.bf16.msra.mxu0 %v2951_v34  ;;  %2925 = vmatpush1.bf16.msra.mxu1 %v2951_v34  ;;  %v3194_v59 = vrot.slane %v401_v38, 5  ;;  %v316_v36 = vld [vmem:[%s3062_s28 + $0x58] sm:$0xf] }
  0x26   : > { %v1224_v57 = vsel %vm3130_vm8, %v1215_v45, %v1223_v47  ;;  %v398_v58 = vor.u32 %v397_v48, %v3172_v42  ;;  %v919_v60 = vrot.slane %v3175_v43, 5  ;;  %2260 = vmatprep.subr.bf16.mxu0 %v3001_v0  ;;  %2916 = vmatprep.subr.bf16.mxu1 %v3001_v0  ;;  %v1235_v2 = vshrl.u32 %v1140_v50, 16 }
  0x27   : > { %v384_v61 = vrot.slane %v382_v52, 4  ;;  %v387_v62 = vrot.slane %v385_v53, 5  ;;  %v918_v63 = vrot.slane %v916_v54, 4  ;;  %v2814_v6 = vrot.slane %v3178_v44, 9 }
  0x28   : > { %693 = vrot.lane.b32.xlu0 %v370_v41, %s3003_s11  ;;  %1567 = vrot.lane.b32.xlu1 %v1224_v57, %s3004_s14  ;;  %v399_v5 = vrot.slane %v398_v58, 4  ;;  %v1238_v7 = vshll.u32 %v1140_v50, 16  ;;  %v1245_v8 = vshrl.u32 %v1141_v55, 16  ;;  %v1237_v12 = vrot.slane %v1235_v2, 5  ;;  %v3262_v2 = vld [vmem:[%s3062_s28 + $0x5c] sm:$0xf] }
  0x29   : > { %v388_v10 = vor.u32 %v387_v62, %v384_v61  ;;  %v920_v11 = vsel %vm3064_vm3, %v918_v63, %v919_v60  ;;  %v1248_v13 = vshll.u32 %v1141_v55, 16  ;;  %2261 = vmatpush1.bf16.msra.mxu0 %v2952_v56  ;;  %2926 = vmatpush1.bf16.msra.mxu1 %v2952_v56  ;;  %v1226_v19 = vshrl.u32 %v1139_v4, 16  ;;  %v1142_v62 = vld [vmem:[%s3062_s28 + $0x20] sm:$0xf] }
  0x2a   : > { %v404_v16 = vsel %vm3109_vm7, %v399_v5, %v3194_v59  ;;  %v1240_v17 = vrot.slane %v1238_v7, 6  ;;  %v1247_v18 = vrot.slane %v1245_v8, 5  ;;  %2274 = vmatprep.subr.bf16.mxu0 %v3001_v0  ;;  %2917 = vmatprep.subr.bf16.mxu1 %v3001_v0  ;;  %v1229_v22 = vshll.u32 %v1139_v4, 16  ;;  %v3270_v8 = vld [vmem:[%s3062_s28 + $0x58] sm:$0xf] }
  0x2b   : > { %v389_v20 = vrot.slane %v388_v10, 4  ;;  %v1250_v21 = vrot.slane %v1248_v13, 6  ;;  %v411_v23 = vshll.u32 %v302_v9, 16  ;;  %v1228_v26 = vrot.slane %v1226_v19, 5 }
  0x2c   : > { %1565 = vrot.lane.b32.xlu0 %v1214_v51, %s3004_s14  ;;  %699 = vrot.lane.b32.xlu1 %v404_v16, %s3003_s11  ;;  %v3219_v25 = vor.u32 %v1240_v17, %v1237_v12  ;;  %v415_v27 = vshrl.u32 %v302_v9, 16  ;;  %v421_v28 = vshll.u32 %v303_v14, 16  ;;  %v1231_v33 = vrot.slane %v1229_v22, 6  ;;  %v1143_v9 = vld [vmem:[%s3062_s28 + $0x24] sm:$0x3] }
  0x2d   : > { %v394_v31 = vsel %vm3109_vm7, %v389_v20, %v3172_v42  ;;  %v3228_v32 = vor.u32 %v1250_v21, %v1247_v18  ;;  %v3230_v34 = vrot.slane %v411_v23, 5  ;;  %2275 = vmatpush2.bf16.msra.mxu0 %v2953_v15  ;;  %2927 = vmatpush2.bf16.msra.mxu1 %v2953_v15  ;;  %v917_v37 = vsel %vm3064_vm3, %v2814_v6, %v916_v54  ;;  %v842_v16 = vld [vmem:[%s3062_s28 + $0x60] sm:$0x1]  ;;  %v1157_v18 = vld [vmem:[%s3062_s28 + $0x5c] sm:$0xf] }
  0x2e   : > { %v1243_v38 = vrot.slane %v3219_v25, 4  ;;  %v417_v39 = vrot.slane %v415_v27, 4  ;;  %v407_v40 = vrot.slane %v405_v49, 4  ;;  %2276 = vmatprep.subr.bf16.mxu0 %v3001_v0  ;;  %2918 = vmatprep.subr.bf16.mxu1 %v3001_v0  ;;  %v1232_v41 = vor.u32 %v1231_v33, %v1228_v26  ;;  %v3246_v49 = vld [vmem:[%s3062_s28 + $0x20] sm:$0xf] }
  0x2f   : > { %v423_v42 = vrot.slane %v421_v28, 5  ;;  %v543_v44 = vshll.u32 %v317_v29, 16  ;;  %v547_v45 = vshrl.u32 %v317_v29, 16  ;;  %v553_v50 = vshll.u32 %v318_v35, 16  ;;  %v1158_v23 = vld [vmem:[%s3062_s28 + $0x60] sm:$0x3] }
  0x30   : > { %697 = vrot.lane.b32.xlu0 %v394_v31, %s3003_s11  ;;  %1015 = vrot.lane.b32.xlu1 %v920_v11, %s3002_s8  ;;  %v418_v47 = vor.u32 %v417_v39, %v3230_v34  ;;  %v408_v48 = vor.u32 %v407_v40, %v3194_v59  ;;  %v533_v24 = vshll.u32 %v316_v36, 16  ;;  %v1252_v0 = vsel %vm3130_vm8, %v1243_v38, %v3228_v32  ;;  %v827_v59 = vld [vmem:[%s3062_s28 + $0x24] sm:$0x1]  ;;  %v1156_v27 = vld [vmem:[%s3062_s28 + $0x58] sm:$0xf] }
  0x31   : > { %v1233_v51 = vrot.slane %v1232_v41, 4  ;;  %v3251_v52 = vrot.slane %v543_v44, 5  ;;  %v549_v53 = vrot.slane %v547_v45, 4  ;;  %2277 = vmatpush2.bf16.msra.mxu0 %v2954_v30  ;;  %2928 = vmatpush2.bf16.msra.mxu1 %v2954_v30  ;;  %v537_v56 = vshrl.u32 %v316_v36, 16  ;;  %v305_v41 = vld [vmem:[%s3062_s28 + $0x2c] sm:$0xf] }
  0x32   : > { %v419_v54 = vrot.slane %v418_v47, 4  ;;  %v3253_v55 = vrot.slane %v533_v24, 5  ;;  %v409_v57 = vrot.slane %v408_v48, 4  ;;  %v922_v61 = vrot.slane %v3246_v49, 5 }
  0x33   : > { %v550_v58 = vor.u32 %v549_v53, %v3251_v52  ;;  %v539_v63 = vrot.slane %v537_v56, 4  ;;  %v1242_v4 = vsel %vm3130_vm8, %v1233_v51, %v3219_v25  ;;  %v555_v7 = vrot.slane %v553_v50, 5  ;;  %v304_v51 = vld [vmem:[%s3062_s28 + $0x28] sm:$0xf] }
  0x34   : > { %1013 = vrot.lane.b32.xlu0 %v917_v37, %s3002_s8  ;;  %1571 = vrot.lane.b32.xlu1 %v1252_v0, %s3004_s14  ;;  %v424_v5 = vsel %vm3109_vm7, %v419_v54, %v423_v42  ;;  %v924_v11 = vrot.slane %v922_v61, 4  ;;  %v925_v12 = vrot.slane %v827_v59, 5  ;;  %v1255_v13 = vshrl.u32 %v1142_v62, 16 }
  0x35   : > { %v551_v6 = vrot.slane %v550_v58, 4  ;;  %v540_v10 = vor.u32 %v539_v63, %v3253_v55  ;;  %v414_v14 = vsel %vm3109_vm7, %v409_v57, %v3230_v34  ;;  %v921_v15 = vrot.slane %v919_v60, 4  ;;  %v320_v58 = vld [vmem:[%s3062_s28 + $0x68] sm:$0xf]  ;;  %v3312_v63 = vld [vmem:[%s3062_s28 + $0x30] sm:$0xf] }
  0x36   : > { %v1258_v17 = vshll.u32 %v1142_v62, 16  ;;  %v961_v19 = vrot.slane %v3262_v2, 5  ;;  %v4593_v20 = vrot.slane %v3270_v8, 5  ;;  %v1257_v21 = vrot.slane %v1255_v13, 5 }
  0x37   : > { %v1265_v22 = vshrl.u32 %v1143_v9, 16  ;;  %v556_v25 = vsel %vm3109_vm7, %v551_v6, %v555_v7  ;;  %v541_v43 = vrot.slane %v540_v10, 4  ;;  %v1268_v60 = vshll.u32 %v1143_v9, 16 }
  0x38   : > { %1569 = vrot.lane.b32.xlu0 %v1242_v4, %s3004_s14  ;;  %703 = vrot.lane.b32.xlu1 %v424_v5, %s3003_s11  ;;  %v1260_v26 = vrot.slane %v1258_v17, 6  ;;  %v926_v28 = vsel %vm3064_vm3, %v924_v11, %v925_v12  ;;  %v964_v29 = vrot.slane %v842_v16, 5  ;;  %v1399_v31 = vshrl.u32 %v1157_v18, 16 }
  0x39   : > { %v1267_v30 = vrot.slane %v1265_v22, 5  ;;  %v1270_v34 = vrot.slane %v1268_v60, 6  ;;  %v1402_v35 = vshll.u32 %v1157_v18, 16  ;;  %v1409_v36 = vshrl.u32 %v1158_v23, 16  ;;  %v3331_v22 = vld [vmem:[%s3062_s28 + $0x6c] sm:$0xf] }
  0x3a   : > { %v1261_v33 = vor.u32 %v1260_v26, %v1257_v21  ;;  %v1401_v37 = vrot.slane %v1399_v31, 5  ;;  %v1412_v38 = vshll.u32 %v1158_v23, 16  ;;  %v1389_v39 = vshrl.u32 %v1156_v27, 16  ;;  %v229_v60 = vld [vmem:[%s3062_s28] sm:$0xf] }
  0x3b   : > { %v1392_v40 = vshll.u32 %v1156_v27, 16  ;;  %v546_v42 = vsel %vm3109_vm7, %v541_v43, %v3251_v52  ;;  %v963_v44 = vrot.slane %v961_v19, 4  ;;  %v960_v45 = vrot.slane %v4593_v20, 4  ;;  %262 = vst.msk [vmem:[#allocation2] sm:$0xf] %vm261_vm9, %v229_v60 }
  0x3c   : > { %701 = vrot.lane.b32.xlu0 %v414_v14, %s3003_s11  ;;  %727 = vrot.lane.b32.xlu1 %v556_v25, %s3003_s11  ;;  %v1404_v47 = vrot.slane %v1402_v35, 6  ;;  %v1263_v48 = vrot.slane %v1261_v33, 4  ;;  %v1271_v50 = vor.u32 %v1270_v34, %v1267_v30  ;;  %v1411_v24 = vrot.slane %v1409_v36, 5  ;;  %v3334_v25 = vld [vmem:[%s3062_s28 + $0x2c] sm:$0xf] }
  0x3d   : > { %v1414_v0 = vrot.slane %v1412_v38, 6  ;;  %v1391_v53 = vrot.slane %v1389_v39, 5  ;;  %v1394_v54 = vrot.slane %v1392_v40, 6  ;;  %v435_v56 = vshll.u32 %v305_v41, 16  ;;  %v3350_v36 = vld [vmem:[%s3062_s28 + $0x30] sm:$0xf] }
  0x3e   : > { %v439_v57 = vshrl.u32 %v305_v41, 16  ;;  %v923_v52 = vsel %vm3064_vm3, %v921_v15, %v922_v61  ;;  %v1405_v59 = vor.u32 %v1404_v47, %v1401_v37  ;;  %v965_v62 = vsel %vm3064_vm3, %v963_v44, %v964_v29  ;;  %v319_v61 = vld [vmem:[%s3062_s28 + $0x64] sm:$0xf]  ;;  %v3353_v37 = vld [vmem:[%s3062_s28 + $0x68] sm:$0xf] }
  0x3f   : > { %v3314_v2 = vrot.slane %v435_v56, 5  ;;  %v426_v5 = vshrl.u32 %v304_v51, 16  ;;  %v962_v6 = vsel %vm3064_vm3, %v960_v45, %v961_v19  ;;  %v1253_v7 = vrot.slane %v3228_v32, 4  ;;  %v1145_v38 = vld [vmem:[%s3062_s28 + $0x2c] sm:$0xf] }
  0x40   : > { %725 = vrot.lane.b32.xlu0 %v546_v42, %s3003_s11  ;;  %1019 = vrot.lane.b32.xlu1 %v926_v28, %s3002_s8  ;;  %v441_v4 = vrot.slane %v439_v57, 4  ;;  %v429_v49 = vshll.u32 %v304_v51, 16  ;;  %v567_v9 = vshll.u32 %v320_v58, 16  ;;  %v1272_v10 = vsel %vm3130_vm8, %v1263_v48, %v1271_v50  ;;  %v3358_v40 = vld [vmem:[%s3062_s28 + $0x28] sm:$0xe] }
  0x41   : > { %v1415_v11 = vor.u32 %v1414_v0, %v1411_v24  ;;  %v3322_v12 = vor.u32 %v1394_v54, %v1391_v53  ;;  %v571_v13 = vshrl.u32 %v320_v58, 16  ;;  %v1407_v14 = vrot.slane %v1405_v59, 4  ;;  %v3361_v41 = vld [vmem:[%s3062_s28 + $0x6c] sm:$0xf]  ;;  %v1146_v42 = vld [vmem:[%s3062_s28 + $0x30] sm:$0xf] }
  0x42   : > { %v442_v32 = vor.u32 %v441_v4, %v3314_v2  ;;  %v445_v15 = vshll.u32 %v3312_v63, 16  ;;  %v428_v16 = vrot.slane %v426_v5, 4  ;;  %v431_v17 = vrot.slane %v429_v49, 5  ;;  %v230_v44 = vld [vmem:[%s3062_s28 + $0x4] sm:$0xf] }
  0x43   : > { %v3328_v18 = vrot.slane %v567_v9, 5  ;;  %v573_v19 = vrot.slane %v571_v13, 4  ;;  %v558_v21 = vshrl.u32 %v319_v61, 16  ;;  %v561_v23 = vshll.u32 %v319_v61, 16  ;;  %263 = vst.msk [vmem:[#allocation2 + $0x8] sm:$0xf] %vm261_vm9, %v230_v44 }
  0x44   : > { %1017 = vrot.lane.b32.xlu0 %v923_v52, %s3002_s8  ;;  %1043 = vrot.lane.b32.xlu1 %v965_v62, %s3002_s8  ;;  %v1262_v43 = vsel %vm3130_vm8, %v1253_v7, %v1261_v33  ;;  %v1397_v26 = vrot.slane %v3322_v12, 4  ;;  %v1416_v27 = vsel %vm3130_vm8, %v1407_v14, %v1415_v11  ;;  %v3344_v28 = vrot.slane %v445_v15, 5  ;;  %v1144_v0 = vld [vmem:[%s3062_s28 + $0x28] sm:$0xe]  ;;  %v1159_v58 = vld [vmem:[%s3062_s28 + $0x64] sm:$0xe] }
  0x45   : > { %v560_v29 = vrot.slane %v558_v21, 4  ;;  %v563_v30 = vrot.slane %v561_v23, 5  ;;  %v443_v31 = vrot.slane %v442_v32, 4  ;;  %v432_v33 = vor.u32 %v431_v17, %v428_v16  ;;  %v1160_v51 = vld [vmem:[%s3062_s28 + $0x68] sm:$0xf] }
  0x46   : > { %v574_v34 = vor.u32 %v573_v19, %v3328_v18  ;;  %v577_v35 = vshll.u32 %v3331_v22, 16  ;;  %v929_v39 = vrot.slane %v3334_v25, 5  ;;  %v449_v45 = vshrl.u32 %v3312_v63, 16  ;;  %v307_v5 = vld [vmem:[%s3062_s28 + $0x34] sm:$0xf] }
  0x47   : > { %v1406_v47 = vsel %vm3130_vm8, %v1397_v26, %v1405_v59  ;;  %v564_v48 = vor.u32 %v563_v30, %v560_v29  ;;  %v1283_v50 = vshrl.u32 %v1145_v38, 16  ;;  %v1286_v24 = vshll.u32 %v1145_v38, 16  ;;  %v843_v15 = vld [vmem:[%s3062_s28 + $0x64] sm:$0xe]  ;;  %v1161_v16 = vld [vmem:[%s3062_s28 + $0x6c] sm:$0xf] }
  0x48   : > { %1041 = vrot.lane.b32.xlu0 %v962_v6, %s3002_s8  ;;  %1575 = vrot.lane.b32.xlu1 %v1272_v10, %s3004_s14  ;;  %v448_v53 = vsel %vm3109_vm7, %v443_v31, %v3344_v28  ;;  %v433_v54 = vrot.slane %v432_v33, 4  ;;  %v575_v56 = vrot.slane %v574_v34, 4  ;;  %v3376_v57 = vrot.slane %v577_v35, 5  ;;  %v322_v31 = vld [vmem:[%s3062_s28 + $0x70] sm:$0xf] }
  0x49   : > { %v931_v52 = vrot.slane %v929_v39, 4  ;;  %v932_v62 = vrot.slane %v3350_v36, 5  ;;  %v968_v59 = vrot.slane %v3353_v37, 5  ;;  %v1293_v4 = vshrl.u32 %v1146_v42, 16  ;;  %v831_v37 = vld [vmem:[%s3062_s28 + $0x34] sm:$0xf] }
  0x4a   : > { %v2815_v6 = vrot.slane %v3358_v40, 9  ;;  %v971_v7 = vrot.slane %v3361_v41, 5  ;;  %v1296_v49 = vshll.u32 %v1146_v42, 16  ;;  %v1274_v9 = vshrl.u32 %v1144_v0, 16  ;;  %v231_v40 = vld [vmem:[%s3062_s28 + $0x8] sm:$0xf] }
  0x4b   : > { %v565_v61 = vrot.slane %v564_v48, 4  ;;  %v1285_v10 = vrot.slane %v1283_v50, 5  ;;  %v1288_v11 = vrot.slane %v1286_v24, 6  ;;  %v1277_v13 = vshll.u32 %v1144_v0, 16  ;;  %264 = vst.msk [vmem:[#allocation2 + $0x10] sm:$0xf] %vm261_vm9, %v231_v40 }
  0x4c   : > { %1573 = vrot.lane.b32.xlu0 %v1262_v43, %s3004_s14  ;;  %1599 = vrot.lane.b32.xlu1 %v1416_v27, %s3004_s14  ;;  %v438_v14 = vsel %vm3109_vm7, %v433_v54, %v3314_v2  ;;  %v580_v32 = vsel %vm3109_vm7, %v575_v56, %v3376_v57  ;;  %v1427_v17 = vshrl.u32 %v1160_v51, 16  ;;  %v1430_v19 = vshll.u32 %v1160_v51, 16  ;;  %v232_v2 = vld [vmem:[%s3062_s28 + $0xc] sm:$0xf]  ;;  %v3474_v40 = vld [vmem:[%s3062_s28 + $0x74] sm:$0x1] }
  0x4d   : > { %v933_v21 = vsel %vm3064_vm3, %v931_v52, %v932_v62  ;;  %v970_v23 = vrot.slane %v968_v59, 4  ;;  %v1295_v43 = vrot.slane %v1293_v4, 5  ;;  %v1418_v26 = vshrl.u32 %v1159_v58, 16  ;;  %265 = vst.msk [vmem:[#allocation2 + $0x18] sm:$0xf] %vm261_vm9, %v232_v2 }
  0x4e   : > { %v1298_v60 = vrot.slane %v1296_v49, 6  ;;  %v1276_v27 = vrot.slane %v1274_v9, 5  ;;  %v1421_v29 = vshll.u32 %v1159_v58, 16  ;;  %v455_v30 = vshll.u32 %v307_v5, 16  ;;  %v1147_v2 = vld [vmem:[%s3062_s28 + $0x34] sm:$0xf] }
  0x4f   : > { %v570_v33 = vsel %vm3109_vm7, %v565_v61, %v3328_v18  ;;  %v3410_v34 = vor.u32 %v1288_v11, %v1285_v10  ;;  %v1279_v35 = vrot.slane %v1277_v13, 6  ;;  %v459_v38 = vshrl.u32 %v307_v5, 16  ;;  %v323_v11 = vld [vmem:[%s3062_s28 + $0x74] sm:$0x1] }
  0x50   : > { %1597 = vrot.lane.b32.xlu0 %v1406_v47, %s3004_s14  ;;  %707 = vrot.lane.b32.xlu1 %v448_v53, %s3003_s11  ;;  %v1429_v42 = vrot.slane %v1427_v17, 5  ;;  %v1432_v44 = vrot.slane %v1430_v19, 6  ;;  %v1437_v47 = vshrl.u32 %v1161_v16, 16  ;;  %v1440_v48 = vshll.u32 %v1161_v16, 16  ;;  %v308_v53 = vld [vmem:[%s3062_s28 + $0x38] sm:$0x1] }
  0x51   : > { %v930_v50 = vsel %vm3064_vm3, %v2815_v6, %v929_v39  ;;  %v972_v18 = vsel %vm3064_vm3, %v970_v23, %v971_v7  ;;  %v2818_v24 = vrot.slane %v843_v15, 9  ;;  %v1420_v0 = vrot.slane %v1418_v26, 5  ;;  %v234_v15 = vld [vmem:[%s3062_s28 + $0x18] sm:$0xf] }
  0x52   : > { %v1423_v51 = vrot.slane %v1421_v29, 6  ;;  %v3423_v54 = vrot.slane %v455_v30, 5  ;;  %v461_v56 = vrot.slane %v459_v38, 4  ;;  %v451_v58 = vrot.slane %v449_v45, 4  ;;  %267 = vst.msk [vmem:[#allocation2 + $0x28] sm:$0xf] %vm261_vm9, %v234_v15 }
  0x53   : > { %v3429_v25 = vor.u32 %v1298_v60, %v1295_v43  ;;  %v1280_v39 = vor.u32 %v1279_v35, %v1276_v27  ;;  %v587_v52 = vshll.u32 %v322_v31, 16  ;;  %v591_v4 = vshrl.u32 %v322_v31, 16  ;;  %v832_v31 = vld [vmem:[%s3062_s28 + $0x38] sm:$0x1]  ;;  %v3471_v38 = vld [vmem:[%s3062_s28 + $0x70] sm:$0xf] }
  0x54   : > { %705 = vrot.lane.b32.xlu0 %v438_v14, %s3003_s11  ;;  %731 = vrot.lane.b32.xlu1 %v580_v32, %s3003_s11  ;;  %v1291_v5 = vrot.slane %v3410_v34, 4  ;;  %v3432_v6 = vor.u32 %v1432_v44, %v1429_v42  ;;  %v1439_v49 = vrot.slane %v1437_v47, 5  ;;  %v1442_v9 = vrot.slane %v1440_v48, 6  ;;  %v1148_v42 = vld [vmem:[%s3062_s28 + $0x38] sm:$0x3] }
  0x55   : > { %v581_v63 = vshrl.u32 %v3331_v22, 16  ;;  %v969_v45 = vsel %vm3064_vm3, %v2818_v24, %v968_v59  ;;  %v1424_v61 = vor.u32 %v1423_v51, %v1420_v0  ;;  %v465_v10 = vshll.u32 %v308_v53, 16  ;;  %v236_v51 = vld [vmem:[%s3062_s28 + $0x20] sm:$0xf] }
  0x56   : > { %v462_v13 = vor.u32 %v461_v56, %v3423_v54  ;;  %v452_v14 = vor.u32 %v451_v58, %v3344_v28  ;;  %v3444_v32 = vrot.slane %v587_v52, 5  ;;  %v593_v22 = vrot.slane %v591_v4, 4  ;;  %v310_v58 = vld [vmem:[%s3062_s28 + $0x40] sm:$0xf]  ;;  %269 = vst.msk [vmem:[#allocation2 + $0x38] sm:$0xf] %vm261_vm9, %v236_v51 }
  0x57   : > { %v1300_v59 = vsel %vm3130_vm8, %v1291_v5, %v3429_v25  ;;  %v1281_v16 = vrot.slane %v1280_v39, 4  ;;  %v1435_v17 = vrot.slane %v3432_v6, 4  ;;  %v3452_v19 = vor.u32 %v1442_v9, %v1439_v49  ;;  %v235_v39 = vld [vmem:[%s3062_s28 + $0x1c] sm:$0xf] }
  0x58   : > { %729 = vrot.lane.b32.xlu0 %v570_v33, %s3003_s11  ;;  %1023 = vrot.lane.b32.xlu1 %v933_v21, %s3002_s8  ;;  %v233_v21 = vld [vmem:[%s3062_s28 + $0x14] sm:$0xf]  ;;  %v597_v28 = vshll.u32 %v323_v11, 16  ;;  %v467_v23 = vrot.slane %v465_v10, 5  ;;  %v583_v43 = vrot.slane %v581_v63, 4  ;;  %v935_v26 = vrot.slane %v831_v37, 5 }
  0x59   : > { %266 = vst.msk [vmem:[#allocation2 + $0x20] sm:$0xf] %vm261_vm9, %v233_v21  ;;  %v1425_v60 = vrot.slane %v1424_v61, 4  ;;  %v463_v27 = vrot.slane %v462_v13, 4  ;;  %v3460_v29 = vrot.slane %v452_v14, 4  ;;  %v594_v30 = vor.u32 %v593_v22, %v3444_v32 }
  0x5a   : > { %v1290_v33 = vsel %vm3130_vm8, %v1281_v16, %v3410_v34  ;;  %v1444_v35 = vsel %vm3130_vm8, %v1435_v17, %v3452_v19  ;;  %v599_v44 = vrot.slane %v597_v28, 5  ;;  %v1303_v47 = vshrl.u32 %v1147_v2, 16  ;;  %v309_v49 = vld [vmem:[%s3062_s28 + $0x3c] sm:$0xf]  ;;  %268 = vst.msk [vmem:[#allocation2 + $0x30] sm:$0xf] %vm261_vm9, %v235_v39 }
  0x5b   : > { %v1306_v48 = vshll.u32 %v1147_v2, 16  ;;  %v937_v24 = vrot.slane %v935_v26, 4  ;;  %v938_v34 = vrot.slane %v832_v31, 5  ;;  %v934_v0 = vrot.slane %v932_v62, 4  ;;  %v1163_v62 = vld [vmem:[%s3062_s28 + $0x74] sm:$0x3] }
  0x5c   : > { %1021 = vrot.lane.b32.xlu0 %v930_v50, %s3002_s8  ;;  %1047 = vrot.lane.b32.xlu1 %v972_v18, %s3002_s8  ;;  %v1162_v50 = vld [vmem:[%s3062_s28 + $0x70] sm:$0xf]  ;;  %v584_v18 = vor.u32 %v583_v43, %v3376_v57  ;;  %v1434_v53 = vsel %vm3130_vm8, %v1425_v60, %v3432_v6  ;;  %v468_v56 = vsel %vm3109_vm7, %v463_v27, %v467_v23  ;;  %v595_v36 = vrot.slane %v594_v30, 4  ;;  %v248_v61 = vld [vmem:[%s3062_s28 + $0x5c] sm:$0xf] }
  0x5d   : > { %v458_v57 = vsel %vm3109_vm7, %v3460_v29, %v3423_v54  ;;  %v974_v52 = vrot.slane %v3471_v38, 5  ;;  %v977_v4 = vrot.slane %v3474_v40, 5  ;;  %v1447_v5 = vshrl.u32 %v1162_v50, 16  ;;  %v325_v22 = vld [vmem:[%s3062_s28 + $0x7c] sm:$0xf] }
  0x5e   : > { %v1450_v6 = vshll.u32 %v1162_v50, 16  ;;  %v1305_v9 = vrot.slane %v1303_v47, 5  ;;  %v1308_v54 = vrot.slane %v1306_v48, 6  ;;  %v1313_v63 = vshrl.u32 %v1148_v42, 16  ;;  %281 = vst.msk [vmem:[#allocation2 + $0x98] sm:$0xf] %vm261_vm9, %v248_v61 }
  0x5f   : > { %v585_v10 = vrot.slane %v584_v18, 4  ;;  %v939_v11 = vsel %vm3064_vm3, %v937_v24, %v938_v34  ;;  %v3506_v13 = vsel %vm3064_vm3, %v934_v0, %v935_v26  ;;  %v479_v14 = vshll.u32 %v310_v58, 16  ;;  %v247_v37 = vld [vmem:[%s3062_s28 + $0x58] sm:$0xf]  ;;  %v3527_v34 = vld [vmem:[%s3062_s28 + $0x44] sm:$0xf] }
  0x60   : > { %1045 = vrot.lane.b32.xlu0 %v969_v45, %s3002_s8  ;;  %1579 = vrot.lane.b32.xlu1 %v1300_v59, %s3004_s14  ;;  %v1316_v45 = vshll.u32 %v1148_v42, 16  ;;  %v600_v15 = vsel %vm3109_vm7, %v595_v36, %v599_v44  ;;  %v483_v59 = vshrl.u32 %v310_v58, 16  ;;  %v470_v16 = vshrl.u32 %v309_v49, 16  ;;  %v324_v21 = vld [vmem:[%s3062_s28 + $0x78] sm:$0xf] }
  0x61   : > { %v473_v17 = vshll.u32 %v309_v49, 16  ;;  %280 = vst.msk [vmem:[#allocation2 + $0x90] sm:$0xf] %vm261_vm9, %v247_v37  ;;  %v1449_v28 = vrot.slane %v1447_v5, 5  ;;  %v1452_v23 = vrot.slane %v1450_v6, 6  ;;  %v1457_v43 = vshrl.u32 %v1163_v62, 16 }
  0x62   : > { %v1460_v26 = vshll.u32 %v1163_v62, 16  ;;  %v976_v2 = vrot.slane %v974_v52, 4  ;;  %v1309_v60 = vor.u32 %v1308_v54, %v1305_v9  ;;  %v1315_v27 = vrot.slane %v1313_v63, 5  ;;  %v834_v39 = vld [vmem:[%s3062_s28 + $0x40] sm:$0xf] }
  0x63   : > { %v1318_v29 = vrot.slane %v1316_v45, 6  ;;  %v3519_v30 = vrot.slane %v479_v14, 5  ;;  %v611_v31 = vshll.u32 %v325_v22, 16  ;;  %v485_v40 = vrot.slane %v483_v59, 4  ;;  %v3545_v6 = vld [vmem:[%s3062_s28 + $0x7c] sm:$0xf] }
  0x64   : > { %1577 = vrot.lane.b32.xlu0 %v1290_v33, %s3004_s14  ;;  %1603 = vrot.lane.b32.xlu1 %v1444_v35, %s3004_s14  ;;  %v615_v33 = vshrl.u32 %v325_v22, 16  ;;  %v602_v35 = vshrl.u32 %v324_v21, 16  ;;  %v472_v42 = vrot.slane %v470_v16, 4  ;;  %v475_v44 = vrot.slane %v473_v17, 5  ;;  %v833_v45 = vld [vmem:[%s3062_s28 + $0x3c] sm:$0xe] }
  0x65   : > { %v605_v47 = vshll.u32 %v324_v21, 16  ;;  %v590_v48 = vsel %vm3109_vm7, %v585_v10, %v3444_v32  ;;  %v1453_v50 = vor.u32 %v1452_v23, %v1449_v28  ;;  %v1459_v18 = vrot.slane %v1457_v43, 5  ;;  %v3562_v22 = vld [vmem:[%s3062_s28 + $0x80] sm:$0xf]  ;;  %v238_v59 = vld [vmem:[%s3062_s28 + $0x2c] sm:$0xf] }
  0x66   : > { %v1462_v24 = vrot.slane %v1460_v26, 6  ;;  %v973_v0 = vrot.slane %v971_v7, 4  ;;  %v1311_v51 = vrot.slane %v1309_v60, 4  ;;  %v3535_v36 = vrot.slane %v611_v31, 5  ;;  %271 = vst.msk [vmem:[#allocation2 + $0x48] sm:$0xf] %vm261_vm9, %v238_v59 }
  0x67   : > { %v617_v62 = vrot.slane %v615_v33, 4  ;;  %v604_v32 = vrot.slane %v602_v35, 4  ;;  %v607_v58 = vrot.slane %v605_v47, 5  ;;  %v978_v41 = vsel %vm3064_vm3, %v976_v2, %v977_v4  ;;  %v237_v23 = vld [vmem:[%s3062_s28 + $0x28] sm:$0xf] }
  0x68   : > { %1601 = vrot.lane.b32.xlu0 %v1434_v53, %s3004_s14  ;;  %711 = vrot.lane.b32.xlu1 %v468_v56, %s3003_s11  ;;  %v1319_v53 = vor.u32 %v1318_v29, %v1315_v27  ;;  %v1301_v56 = vrot.slane %v3429_v25, 4  ;;  %v486_v7 = vor.u32 %v485_v40, %v3519_v30  ;;  %v489_v25 = vshll.u32 %v3527_v34, 16  ;;  %v1151_v27 = vld [vmem:[%s3062_s28 + $0x44] sm:$0xf]  ;;  %270 = vst.msk [vmem:[#allocation2 + $0x40] sm:$0xf] %vm261_vm9, %v237_v23 }
  0x69   : > { %v476_v5 = vor.u32 %v475_v44, %v472_v42  ;;  %v1455_v49 = vrot.slane %v1453_v50, 4  ;;  %v1463_v9 = vor.u32 %v1462_v24, %v1459_v18  ;;  %v1445_v54 = vrot.slane %v3452_v19, 4  ;;  %v1149_v40 = vld [vmem:[%s3062_s28 + $0x3c] sm:$0xe] }
  0x6a   : > { %v975_v4 = vsel %vm3064_vm3, %v973_v0, %v974_v52  ;;  %v1320_v61 = vsel %vm3130_vm8, %v1311_v51, %v1319_v53  ;;  %v1310_v10 = vsel %vm3130_vm8, %v1301_v56, %v1309_v60  ;;  %v942_v14 = vrot.slane %v834_v39, 5  ;;  %v3588_v60 = vld [vmem:[%s3062_s28 + $0x78] sm:$0xe]  ;;  %v312_v56 = vld [vmem:[%s3062_s28 + $0x48] sm:$0xf] }
  0x6b   : > { %v493_v19 = vshrl.u32 %v3527_v34, 16  ;;  %v618_v37 = vor.u32 %v617_v62, %v3535_v36  ;;  %v608_v38 = vor.u32 %v607_v58, %v604_v32  ;;  %v981_v52 = vrot.slane %v3545_v6, 5  ;;  %v1164_v53 = vld [vmem:[%s3062_s28 + $0x78] sm:$0xe]  ;;  %v328_v34 = vld [vmem:[%s3062_s28 + $0x88] sm:$0x1] }
  0x6c   : > { %709 = vrot.lane.b32.xlu0 %v458_v57, %s3003_s11  ;;  %735 = vrot.lane.b32.xlu1 %v600_v15, %s3003_s11  ;;  %v3533_v57 = vld [vmem:[%s3062_s28 + $0x80] sm:$0xf]  ;;  %v3572_v16 = vrot.slane %v486_v7, 4  ;;  %v3574_v17 = vrot.slane %v489_v25, 5  ;;  %v3576_v21 = vrot.slane %v476_v5, 4  ;;  %v2816_v28 = vrot.slane %v833_v45, 9 }
  0x6d   : > { %v621_v63 = vshll.u32 %v3533_v57, 16  ;;  %v1150_v15 = vld [vmem:[%s3062_s28 + $0x40] sm:$0xf]  ;;  %v1464_v43 = vsel %vm3130_vm8, %v1455_v49, %v1463_v9  ;;  %v625_v2 = vshrl.u32 %v3533_v57, 16  ;;  %v944_v29 = vrot.slane %v942_v14, 4 }
  0x6e   : > { %v1331_v33 = vshrl.u32 %v1150_v15, 16  ;;  %v1334_v35 = vshll.u32 %v1150_v15, 16  ;;  %v3594_v42 = vrot.slane %v618_v37, 4  ;;  %v3596_v44 = vrot.slane %v608_v38, 4  ;;  %v249_v9 = vld [vmem:[%s3062_s28 + $0x64] sm:$0xf] }
  0x6f   : > { %v3584_v26 = vrot.slane %v621_v63, 5  ;;  %v983_v47 = vrot.slane %v981_v52, 4  ;;  %v492_v18 = vsel %vm3109_vm7, %v3572_v16, %v3574_v17  ;;  %v482_v24 = vsel %vm3109_vm7, %v3576_v21, %v3519_v30  ;;  %282 = vst.msk [vmem:[#allocation2 + $0xa0] sm:$0xf] %vm261_vm9, %v249_v9  ;;  %v1166_v37 = vld [vmem:[%s3062_s28 + $0x80] sm:$0xf] }
  0x70   : > { %733 = vrot.lane.b32.xlu0 %v590_v48, %s3003_s11  ;;  %1027 = vrot.lane.b32.xlu1 %v939_v11, %s3002_s8  ;;  %v3559_v11 = vld [vmem:[%s3062_s28 + $0x44] sm:$0xf]  ;;  %v984_v48 = vrot.slane %v3562_v22, 5  ;;  %v3614_v0 = vsel %vm3064_vm3, %v2816_v28, %v942_v14  ;;  %v1341_v51 = vshrl.u32 %v1151_v27, 16  ;;  %v2819_v62 = vrot.slane %v3588_v60, 9 }
  0x71   : > { %v945_v31 = vrot.slane %v3559_v11, 5  ;;  %v1344_v32 = vshll.u32 %v1151_v27, 16  ;;  %v1322_v58 = vshrl.u32 %v1149_v40, 16  ;;  %v1325_v39 = vshll.u32 %v1149_v40, 16  ;;  %v3838_v11 = vld [vmem:[%s3062_s28 + $0x84] sm:$0xf] }
  0x72   : > { %v1333_v25 = vrot.slane %v1331_v33, 5  ;;  %v1336_v5 = vrot.slane %v1334_v35, 6  ;;  %v614_v63 = vsel %vm3109_vm7, %v3596_v44, %v3535_v36  ;;  %v3640_v45 = vsel %vm3064_vm3, %v983_v47, %v984_v48 }
  0x73   : > { %v3624_v7 = vsel %vm3064_vm3, %v944_v29, %v945_v31  ;;  %v1343_v14 = vrot.slane %v1341_v51, 5  ;;  %v1466_v38 = vshrl.u32 %v1164_v53, 16  ;;  %v1469_v15 = vshll.u32 %v1164_v53, 16  ;;  %v1690_v29 = vld [vmem:[%s3062_s28] sm:$0xc] }
  0x74   : > { %1025 = vrot.lane.b32.xlu0 %v3506_v13, %s3002_s8  ;;  %1051 = vrot.lane.b32.xlu1 %v978_v41, %s3002_s8  ;;  %v1454_v13 = vsel %vm3130_vm8, %v1445_v54, %v1453_v50  ;;  %v1165_v50 = vld [vmem:[%s3062_s28 + $0x7c] sm:$0xf]  ;;  %v250_v41 = vld [vmem:[%s3062_s28 + $0x68] sm:$0xf]  ;;  %v624_v54 = vsel %vm3109_vm7, %v3594_v42, %v3584_v26  ;;  %v499_v59 = vshll.u32 %v312_v56, 16  ;;  %v1346_v16 = vrot.slane %v1344_v32, 6 }
  0x75   : > { %v1475_v49 = vshrl.u32 %v1165_v50, 16  ;;  %283 = vst.msk [vmem:[#allocation2 + $0xa8] sm:$0xf] %vm261_vm9, %v250_v41  ;;  %v1324_v28 = vrot.slane %v1322_v58, 5  ;;  %v1327_v23 = vrot.slane %v1325_v39, 6  ;;  %v503_v27 = vshrl.u32 %v312_v56, 16 }
  0x76   : > { %v3648_v33 = vor.u32 %v1336_v5, %v1333_v25  ;;  %v1691_v42 = vld [vmem:[%s3062_s28 + $0x4] sm:$0xf]  ;;  %v1692_v51 = vld [vmem:[%s3062_s28 + $0x8] sm:$0xf]  ;;  %v1468_v53 = vrot.slane %v1466_v38, 5  ;;  %v1471_v56 = vrot.slane %v1469_v15, 6 }
  0x77   : > { %v1477_v35 = vrot.slane %v1475_v49, 5  ;;  %v313_v32 = vld [vmem:[%s3062_s28 + $0x4c] sm:$0x1]  ;;  %v3655_v58 = vrot.slane %v499_v59, 5  ;;  %v505_v39 = vrot.slane %v503_v27, 4  ;;  %v495_v41 = vrot.slane %v493_v19, 4 }
  0x78   : > { %1049 = vrot.lane.b32.xlu0 %v975_v4, %s3002_s8  ;;  %1583 = vrot.lane.b32.xlu1 %v1320_v61, %s3004_s14  ;;  %v1478_v4 = vshll.u32 %v1165_v50, 16  ;;  %v327_v61 = vld [vmem:[%s3062_s28 + $0x84] sm:$0xf]  ;;  %v1488_v50 = vshll.u32 %v1166_v37, 16  ;;  %v2821_v5 = vrot.slane %v1690_v29, 10  ;;  %v627_v19 = vrot.slane %v625_v2, 4 }
  0x79   : > { %v631_v40 = vshll.u32 %v327_v61, 16  ;;  %v240_v49 = vld [vmem:[%s3062_s28 + $0x34] sm:$0xf]  ;;  %v1472_v2 = vor.u32 %v1471_v56, %v1468_v53  ;;  %v1693_v27 = vld [vmem:[%s3062_s28 + $0xc] sm:$0xf]  ;;  %vm2197_vm0 = vcmask 261120  }
  0x7a   : > { %v1480_v47 = vrot.slane %v1478_v4, 6  ;;  %273 = vst.msk [vmem:[#allocation2 + $0x58] sm:$0xf] %vm261_vm9, %v240_v49  ;;  %v1490_v57 = vrot.slane %v1488_v50, 6  ;;  %v1694_v29 = vld [vmem:[%s3062_s28 + $0x10] sm:$0x3] }
  0x7b   : > { %v3664_v9 = vrot.slane %v631_v40, 5  ;;  %v641_v50 = vshll.u32 %v328_v34, 16  ;;  %v1781_v53 = vrot.slane %v1693_v27, 6  ;;  %v1784_v56 = vrot.slane %v1694_v29, 6  ;;  %v3750_v34 = vld [vmem:[%s3062_s28 + $0x84] sm:$0xf] }
  0x7c   : > { %1581 = vrot.lane.b32.xlu0 %v1310_v10, %s3004_s14  ;;  %1607 = vrot.lane.b32.xlu1 %v1464_v43, %s3004_s14  ;;  %v635_v10 = vshrl.u32 %v327_v61, 16  ;;  %v1485_v43 = vshrl.u32 %v1166_v37, 16  ;;  %v1778_v61 = vrot.slane %v1692_v51, 6  ;;  %v239_v37 = vld [vmem:[%s3062_s28 + $0x30] sm:$0xf]  ;;  %v628_v51 = vor.u32 %v627_v19, %v3584_v26 }
  0x7d   : > { %272 = vst.msk [vmem:[#allocation2 + $0x50] sm:$0xf] %vm261_vm9, %v239_v37  ;;  %v3743_v37 = vrot.slane %v641_v50, 5  ;;  %v982_v19 = vsel %vm3064_vm3, %v2819_v62, %v981_v52  ;;  %v3784_v62 = vld [vmem:[%s3062_s28 + $0x50] sm:$0xf]  ;;  %vm2675_vm5 = vcmask 1041409  }
  0x7e   : > { %v637_v4 = vrot.slane %v635_v10, 4  ;;  %v1487_v38 = vrot.slane %v1485_v43, 5  ;;  %v506_v10 = vor.u32 %v505_v39, %v3655_v58  ;;  %v1780_v21 = vrot.slane %v1778_v61, 4 }
  0x7f   : > { %v3720_v39 = vrot.slane %v1472_v2, 4  ;;  %v254_v2 = vld [vmem:[%s3062_s28 + $0x7c] sm:$0xf]  ;;  %vm3007_vm6 = vmmov 0   ;;  %vm2683_vm10 = vcmask 1045509   ;;  %vm2685_vm11 = vcmask 1046534  }
  0x80   : > { %1605 = vrot.lane.b32.xlu0 %v1454_v13, %s3004_s14  ;;  %715 = vrot.lane.b32.xlu1 %v492_v18, %s3003_s11  ;;  %v1775_v13 = vrot.slane %v1691_v42, 6  ;;  %v1328_v18 = vor.u32 %v1327_v23, %v1324_v28  ;;  %v3681_v28 = vor.u32 %v1480_v47, %v1477_v35  ;;  %v509_v23 = vshll.u32 %v313_v32, 16  ;;  %287 = vst.msk [vmem:[#allocation2 + $0xc8] sm:$0xf] %vm261_vm9, %v254_v2 }
  0x81   : > { %v496_v42 = vor.u32 %v495_v41, %v3574_v17  ;;  %v1339_v35 = vrot.slane %v3648_v33, 4  ;;  %v3695_v47 = vor.u32 %v1346_v16, %v1343_v14  ;;  %v638_v43 = vor.u32 %v637_v4, %v3664_v9  ;;  %v3705_v14 = vld [vmem:[%s3062_s28 + $0x48] sm:$0xf]  ;;  %v241_v4 = vld [vmem:[%s3062_s28 + $0x3c] sm:$0xf] }
  0x82   : > { %v1776_v15 = vsel %vm3659_vm12, %v2821_v5, %v1775_v13  ;;  %v1777_v59 = vrot.slane %v1775_v13, 4  ;;  %v3701_v17 = vrot.slane %v1328_v18, 4  ;;  %v1483_v26 = vrot.slane %v3681_v28, 4  ;;  %v242_v5 = vld [vmem:[%s3062_s28 + $0x40] sm:$0xf] }
  0x83   : > { %1909 = vst.msk [vmem:[#allocation2 + $0x4] sm:$0xf] %vm261_vm9, %v1776_v15  ;;  %v3718_v32 = vor.u32 %v1490_v57, %v1487_v38  ;;  %v3722_v41 = vrot.slane %v509_v23, 5  ;;  %v3727_v36 = vrot.slane %v506_v10, 4  ;;  %v3729_v44 = vrot.slane %v496_v42, 4 }
  0x84   : > { %713 = vrot.lane.b32.xlu0 %v482_v24, %s3003_s11  ;;  %739 = vrot.lane.b32.xlu1 %v624_v54, %s3003_s11  ;;  %v1779_v30 = vsel %vm3659_vm12, %v1777_v59, %v1778_v61  ;;  %v252_v24 = vld [vmem:[%s3062_s28 + $0x70] sm:$0xf]  ;;  %v251_v54 = vld [vmem:[%s3062_s28 + $0x6c] sm:$0xf]  ;;  %v1782_v49 = vsel %vm3659_vm12, %v1780_v21, %v1781_v53  ;;  %v1783_v18 = vrot.slane %v1781_v53, 4  ;;  %v3741_v61 = vrot.slane %v638_v43, 4 }
  0x85   : > { %v3686_v40 = vpop.permute.xlu1 %1005  ;;  %1910 = vst.msk [vmem:[#allocation2 + $0xc] sm:$0xf] %vm261_vm9, %v1779_v30  ;;  %285 = vst.msk [vmem:[#allocation2 + $0xb8] sm:$0xf] %vm261_vm9, %v252_v24  ;;  %v3747_v38 = vld [vmem:[%s3062_s28 + $0x4c] sm:$0x3]  ;;  %v1348_v6 = vsel %vm3130_vm8, %v1339_v35, %v3695_v47  ;;  %v1338_v52 = vsel %vm3130_vm8, %v3701_v17, %v3648_v33  ;;  %v1492_v60 = vsel %vm3130_vm8, %v1483_v26, %v3718_v32 }
  0x86   : > { %284 = vst.msk [vmem:[#allocation2 + $0xb0] sm:$0xf] %vm261_vm9, %v251_v54  ;;  %275 = vst.msk [vmem:[#allocation2 + $0x68] sm:$0xf] %vm261_vm9, %v242_v5  ;;  %v3759_v15 = vrot.slane %v628_v51, 4  ;;  %v1785_v59 = vsel %vm3659_vm12, %v1783_v18, %v1784_v56  ;;  %v1482_v33 = vsel %vm3130_vm8, %v3720_v39, %v3681_v28  ;;  %v512_v29 = vsel %vm3109_vm7, %v3727_v36, %v3722_v41 }
  0x87   : > { %1911 = vst.msk [vmem:[#allocation2 + $0x14] sm:$0xf] %vm261_vm9, %v1782_v49  ;;  %274 = vst.msk [vmem:[#allocation2 + $0x60] sm:$0xf] %vm261_vm9, %v241_v4  ;;  %v3764_v57 = vld [vmem:[%s3062_s28 + $0x54] sm:$0xf]  ;;  %v502_v10 = vsel %vm3109_vm7, %v3729_v44, %v3655_v58  ;;  %v644_v35 = vsel %vm3109_vm7, %v3741_v61, %v3743_v37 }
  0x88   : > { %737 = vrot.lane.b32.xlu0 %v614_v63, %s3003_s11  ;;  %v3713_v16 = vpop.permute.xlu0 %1009  ;;  %1031 = vrot.lane.b32.xlu1 %v3624_v7, %s3002_s8  ;;  %v3732_v63 = vld [vmem:[%s3062_s28 + $0x48] sm:$0xf]  ;;  %v3735_v7 = vld [vmem:[%s3062_s28 + $0x4c] sm:$0x1]  ;;  %1912 = vst.msk [vmem:[#allocation2 + $0x1c] sm:$0xf] %vm261_vm9, %v1785_v59 }
  0x89   : > { %v3725_v13 = vpop.permute.xlu1 %1007  ;;  %v253_v23 = vld [vmem:[%s3062_s28 + $0x78] sm:$0xf]  ;;  %v1354_v42 = vshll.u32 %v3705_v14, 16  ;;  %v3805_v30 = vld [vmem:[%s3062_s28 + $0x88] sm:$0x3]  ;;  %v948_v43 = vrot.slane %v3732_v63, 5 }
  0x8a   : > { %v1696_v21 = vld [vmem:[%s3062_s28 + $0x18] sm:$0xf]  ;;  %v3809_v24 = vld [vmem:[%s3062_s28 + $0x1c] sm:$0xf]  ;;  %286 = vst.msk [vmem:[#allocation2 + $0xc0] sm:$0xf] %vm261_vm9, %v253_v23 }
  0x8b   : > { %v3820_v17 = vrot.slane %v945_v31, 4  ;;  %v244_v51 = vld [vmem:[%s3062_s28 + $0x48] sm:$0xf]  ;;  %v1361_v56 = vshrl.u32 %v3747_v38, 16  ;;  %v1498_v26 = vshll.u32 %v3750_v34, 16  ;;  %v523_v49 = vshll.u32 %v3764_v57, 16 }
  0x8c   : > { %1029 = vrot.lane.b32.xlu0 %v3614_v0, %s3002_s8  ;;  %1055 = vrot.lane.b32.xlu1 %v3640_v45, %s3002_s8  ;;  %v1351_v0 = vshrl.u32 %v3705_v14, 16  ;;  %v1695_v45 = vld [vmem:[%s3062_s28 + $0x14] sm:$0xc]  ;;  %v1495_v14 = vshrl.u32 %v3750_v34, 16  ;;  %277 = vst.msk [vmem:[#allocation2 + $0x78] sm:$0xf] %vm261_vm9, %v244_v51 }
  0x8d   : > { %v3789_v27 = vpop.permute.xlu1 %1011  ;;  %v243_v5 = vld [vmem:[%s3062_s28 + $0x44] sm:$0xf]  ;;  %v527_v18 = vshrl.u32 %v3764_v57, 16  ;;  %v2822_v4 = vrot.slane %v1695_v45, 10  ;;  %v1364_v59 = vshll.u32 %v3747_v38, 16  ;;  %v517_v2 = vshll.u32 %v3784_v62, 16 }
  0x8e   : > { %v690_v54 = vpop.permute.xlu0 %689  ;;  %v1353_v31 = vrot.slane %v1351_v0, 5  ;;  %276 = vst.msk [vmem:[#allocation2 + $0x70] sm:$0xf] %vm261_vm9, %v243_v5  ;;  %v1505_v0 = vshrl.u32 %v3805_v30, 16  ;;  %v1508_v23 = vshll.u32 %v3805_v30, 16  ;;  %v1791_v57 = vrot.slane %v3809_v24, 6 }
  0x8f   : > { %786 = vst.msk [vmem:[#allocation2] sm:$0xf] %vm785_vm13, %v690_v54  ;;  %v1788_v54 = vrot.slane %v1696_v21, 6  ;;  %v330_v45 = vld [vmem:[%s3062_s28 + $0x90] sm:$0xf]  ;;  %v3854_v38 = vrot.slane %v948_v43, 4 }
  0x90   : > { %1053 = vrot.lane.b32.xlu0 %v982_v19, %s3002_s8  ;;  %1102 = vst.msk [vmem:[#allocation2] sm:$0xf] %vm1101_vm14, %v3686_v40  ;;  %1587 = vrot.lane.b32.xlu1 %v1348_v6, %s3004_s14  ;;  %v1356_v19 = vrot.slane %v1354_v42, 6  ;;  %v514_v40 = vshrl.u32 %v3784_v62, 16  ;;  %v256_v51 = vld [vmem:[%s3062_s28 + $0x84] sm:$0xf] }
  0x91   : > { %v1564_v34 = vpop.permute.xlu1 %1563  ;;  %v3857_v42 = vld [vmem:[%s3062_s28 + $0x88] sm:$0x1]  ;;  %v987_v62 = vrot.slane %v3838_v11, 5  ;;  %v1497_v5 = vrot.slane %v1495_v14, 5  ;;  %v1500_v20 = vrot.slane %v1498_v26, 6  ;;  %v3866_v21 = vrot.slane %v523_v49, 5 }
  0x92   : > { %v692_v6 = vpop.permute.xlu0 %691  ;;  %289 = vst.msk [vmem:[#allocation2 + $0xd8] sm:$0xf] %vm261_vm9, %v256_v51  ;;  %v255_v30 = vld [vmem:[%s3062_s28 + $0x80] sm:$0xf]  ;;  %v1789_v53 = vsel %vm3659_vm12, %v2822_v4, %v1788_v54  ;;  %v1790_v50 = vrot.slane %v1788_v54, 4  ;;  %v519_v26 = vrot.slane %v517_v2, 5 }
  0x93   : > { %787 = vst.msk [vmem:[#allocation2 + $0x8] sm:$0xf] %vm785_vm13, %v692_v6  ;;  %v529_v6 = vrot.slane %v527_v18, 4  ;;  %v3871_v14 = vld [vmem:[%s3062_s28 + $0x8c] sm:$0xf]  ;;  %v1366_v4 = vrot.slane %v1364_v59, 6 }
  0x94   : > { %1103 = vst.msk [vmem:[#allocation2 + $0x8] sm:$0xf] %vm1101_vm14, %v3725_v13  ;;  %1585 = vrot.lane.b32.xlu0 %v1338_v52, %s3004_s14  ;;  %1611 = vrot.lane.b32.xlu1 %v1492_v60, %s3004_s14  ;;  %v3875_v13 = vor.u32 %v1356_v19, %v1353_v31  ;;  %v3877_v52 = vrot.slane %v1361_v56, 5  ;;  %v516_v60 = vrot.slane %v514_v40, 4  ;;  %v1507_v54 = vrot.slane %v1505_v0, 5 }
  0x95   : > { %288 = vst.msk [vmem:[#allocation2 + $0xd0] sm:$0xf] %vm261_vm9, %v255_v30  ;;  %1913 = vst.msk [vmem:[#allocation2 + $0x24] sm:$0xf] %vm261_vm9, %v1789_v53  ;;  %v1510_v51 = vrot.slane %v1508_v23, 6  ;;  %v1792_v30 = vsel %vm3659_vm12, %v1790_v50, %v1791_v57  ;;  %v3894_v53 = vsel %vm3064_vm3, %v3820_v17, %v948_v43  ;;  %v1501_v56 = vor.u32 %v1500_v20, %v1497_v5 }
  0x96   : > { %1659 = vst.msk [vmem:[#allocation2 + $0x8] sm:$0xf] %vm1657_vm15, %v1564_v34  ;;  %v1562_v49 = vpop.permute.xlu0 %1561  ;;  %v696_v18 = vpop.permute.xlu1 %695  ;;  %v3885_v34 = vld [vmem:[%s3062_s28 + $0x94] sm:$0xf]  ;;  %v655_v31 = vshll.u32 %v330_v45, 16  ;;  %v659_v19 = vshrl.u32 %v330_v45, 16  ;;  %v530_v43 = vor.u32 %v529_v6, %v3866_v21  ;;  %v1367_v17 = vor.u32 %v1366_v4, %v3877_v52 }
  0x97   : > { %1658 = vst.msk [vmem:[#allocation2] sm:$0xf] %vm1657_vm15, %v1562_v49  ;;  %v989_v20 = vrot.slane %v987_v62, 4  ;;  %v990_v63 = vrot.slane %v3857_v42, 5  ;;  %v1349_v28 = vrot.slane %v3695_v47, 4  ;;  %v1493_v39 = vrot.slane %v3718_v32, 4 }
  0x98   : > { %789 = vst.msk [vmem:[#allocation2 + $0x18] sm:$0xf] %vm785_vm13, %v696_v18  ;;  %1609 = vrot.lane.b32.xlu0 %v1482_v33, %s3004_s14  ;;  %719 = vrot.lane.b32.xlu1 %v512_v29, %s3003_s11  ;;  %v520_v33 = vor.u32 %v519_v26, %v516_v60  ;;  %v646_v50 = vshrl.u32 %v3871_v14, 16  ;;  %v1359_v29 = vrot.slane %v3875_v13, 4  ;;  %v1511_v59 = vor.u32 %v1510_v51, %v1507_v54  ;;  %v3961_v61 = vld [vmem:[%s3062_s28 + $0x54] sm:$0xf] }
  0x99   : > { %1914 = vst.msk [vmem:[#allocation2 + $0x2c] sm:$0xf] %vm261_vm9, %v1792_v30  ;;  %v649_v22 = vshll.u32 %v3871_v14, 16  ;;  %v1503_v47 = vrot.slane %v1501_v56, 4  ;;  %v3926_v32 = vrot.slane %v655_v31, 5  ;;  %v661_v40 = vrot.slane %v659_v19, 4 }
  0x9a   : > { %1105 = vst.msk [vmem:[#allocation2 + $0x18] sm:$0xf] %vm1101_vm14, %v3789_v27  ;;  %v986_v27 = vrot.slane %v984_v48, 4  ;;  %v694_v41 = vpop.permute.xlu0 %693  ;;  %v1568_v36 = vpop.permute.xlu1 %1567  ;;  %v1155_v48 = vld [vmem:[%s3062_s28 + $0x54] sm:$0xf]  ;;  %v665_v2 = vshll.u32 %v3885_v34, 16  ;;  %v3950_v23 = vsel %vm3064_vm3, %v989_v20, %v990_v63  ;;  %v3976_v14 = vsel %vm3130_vm8, %v1359_v29, %v1367_v17 }
  0x9b   : > { %788 = vst.msk [vmem:[#allocation2 + $0x10] sm:$0xf] %vm785_vm13, %v694_v41  ;;  %v4603_v0 = vrot.slane %v3735_v7, 5  ;;  %v3958_v44 = vrot.slane %v530_v43, 4  ;;  %v3964_v37 = vld [vmem:[%s3062_s28 + $0x90] sm:$0xf]  ;;  %v3981_v52 = vsel %vm3130_vm8, %v1349_v28, %v3875_v13  ;;  %v3985_v60 = vsel %vm3130_vm8, %v1493_v39, %v1501_v56 }
  0x9c   : > { %1661 = vst.msk [vmem:[#allocation2 + $0x18] sm:$0xf] %vm1657_vm15, %v1568_v36  ;;  %717 = vrot.lane.b32.xlu0 %v502_v10, %s3003_s11  ;;  %743 = vrot.lane.b32.xlu1 %v644_v35, %s3003_s11  ;;  %v3956_v58 = vsel %vm3064_vm3, %v986_v27, %v987_v62  ;;  %v3966_v7 = vrot.slane %v520_v33, 4  ;;  %v3968_v10 = vrot.slane %v646_v50, 4  ;;  %v3971_v35 = vld [vmem:[%s3062_s28 + $0x50] sm:$0xe]  ;;  %v3991_v49 = vsel %vm3130_vm8, %v1503_v47, %v1511_v59 }
  0x9d   : > { %1104 = vst.msk [vmem:[#allocation2 + $0x10] sm:$0xf] %vm1101_vm14, %v3713_v16  ;;  %v952_v16 = vsel %vm3064_vm3, %v3854_v38, %v4603_v0  ;;  %v1379_v45 = vshrl.u32 %v1155_v48, 16  ;;  %v1382_v38 = vshll.u32 %v1155_v48, 16  ;;  %v1154_v11 = vld [vmem:[%s3062_s28 + $0x50] sm:$0xe]  ;;  %v662_v18 = vor.u32 %v661_v40, %v3926_v32 }
  0x9e   : > { %v1566_v42 = vpop.permute.xlu0 %1565  ;;  %v2955_v62 = vld [vmem:[#allocation2] ss:$8 sps:$4 sm:$0xff]   ;;  %v2957_v5 = vld [vmem:[#allocation2 + $0x4] ss:$8 sps:$4 sm:$0xff]   ;;  %v700_v6 = vpop.permute.xlu1 %699  ;;  %v651_v26 = vrot.slane %v649_v22, 5  ;;  %v3994_v4 = vrot.slane %v665_v2, 5  ;;  %v4604_v30 = vsel %vm3109_vm7, %v3759_v15, %v3664_v9  ;;  %v536_v56 = vsel %vm3109_vm7, %v3958_v44, %v3253_v55 }
  0x9f   : > { %1660 = vst.msk [vmem:[#allocation2 + $0x10] sm:$0xf] %vm1657_vm15, %v1566_v42  ;;  %v669_v13 = vshrl.u32 %v3885_v34, 16  ;;  %v1170_v54 = vld [vmem:[%s3062_s28 + $0x90] sm:$0xf]  ;;  %2871 = vmatprep.mubr.msk.bf16.mxu0 %vm2197_vm0, %v2957_v5  ;;  %v955_v31 = vrot.slane %v3961_v61, 5  ;;  %v526_v50 = vsel %vm3109_vm7, %v3966_v7, %v3866_v21 }
  0xa0   : > { %791 = vst.msk [vmem:[#allocation2 + $0x28] sm:$0xf] %vm785_vm13, %v700_v6  ;;  %v1698_v51 = vld [vmem:[%s3062_s28 + $0x20] sm:$0xf]  ;;  %741 = vrot.lane.b32.xlu0 %v4604_v30, %s3003_s11  ;;  %v994_v19 = vrot.slane %v3964_v37, 5  ;;  %v1370_v20 = vshrl.u32 %v1154_v11, 16  ;;  %2279 = vmatmul.mubr.bf16.vlgmr.msra.gmra.mxu0 %v2955_v62  ;;  %v652_v41 = vor.u32 %v651_v26, %v3968_v10 }
  0xa1   : > { %v1699_v63 = vld [vmem:[%s3062_s28 + $0x24] sm:$0x3]  ;;  %1035 = vrot.lane.b32.xlu1 %v952_v16, %s3002_s8  ;;  %v4015_v9 = vld [vmem:[%s3062_s28 + $0x94] sm:$0xf]  ;;  %v1381_v15 = vrot.slane %v1379_v45, 5  ;;  %v1384_v27 = vrot.slane %v1382_v38, 6 }
  0xa2   : > { %v1373_v43 = vshll.u32 %v1154_v11, 16  ;;  %v1793_v28 = vrot.slane %v1791_v57, 4  ;;  %v698_v39 = vpop.permute.xlu0 %697  ;;  %v1016_v33 = vpop.permute.xlu1 %1015  ;;  %v2817_v36 = vrot.slane %v3971_v35, 9  ;;  %v4026_v29 = vld [vmem:[%s3062_s28 + $0x8c] sm:$0xe]  ;;  %v1523_v24 = vshrl.u32 %v1170_v54, 16 }
  0xa3   : > { %v4029_v17 = vld [vmem:[%s3062_s28 + $0x94] sm:$0xf]  ;;  %790 = vst.msk [vmem:[#allocation2 + $0x20] sm:$0xf] %vm785_vm13, %v698_v39  ;;  %v4033_v57 = vrot.slane %v662_v18, 4  ;;  %v1526_v59 = vshll.u32 %v1170_v54, 16  ;;  %v4055_v38 = vor.u32 %v1384_v27, %v1381_v15 }
  0xa4   : > { %1107 = vst.msk [vmem:[#allocation2 + $0x28] sm:$0xf] %vm1101_vm14, %v1016_v33  ;;  %v4036_v22 = vld [vmem:[%s3062_s28 + $0x8c] sm:$0xe]  ;;  %v1794_v48 = vrot.slane %v1698_v51, 6  ;;  %v1797_v47 = vrot.slane %v1699_v63, 6  ;;  %1033 = vrot.lane.b32.xlu0 %v3894_v53, %s3002_s8 }
  0xa5   : > { %v4039_v40 = vld [vmem:[%s3062_s28 + $0x58] sm:$0xf]  ;;  %v4042_v2 = vld [vmem:[%s3062_s28 + $0x5c] sm:$0xf]  ;;  %v246_v0 = vld [vmem:[%s3062_s28 + $0x54] sm:$0xf]  ;;  %1059 = vrot.lane.b32.xlu1 %v3950_v23, %s3002_s8  ;;  %v4067_v23 = vsel %vm3064_vm3, %v2817_v36, %v955_v31 }
  0xa6   : > { %v1944_v16 = vld [vmem:[#allocation2 + $0x18] sm:$0xff]  ;;  %v957_v61 = vrot.slane %v955_v31, 4  ;;  %v996_v10 = vrot.slane %v994_v19, 4  ;;  %v4594_v35 = vrot.slane %v4015_v9, 5  ;;  %v4050_v45 = vrot.slane %v1370_v20, 5  ;;  %v1014_v6 = vpop.permute.xlu0 %1013  ;;  %v1943_v26 = vld [vmem:[#allocation2 + $0x10] sm:$0xff]  ;;  %v1572_v54 = vpop.permute.xlu1 %1571 }
  0xa7   : > { %279 = vst.msk [vmem:[#allocation2 + $0x88] sm:$0xf] %vm261_vm9, %v246_v0  ;;  %v4057_v11 = vrot.slane %v1373_v43, 6  ;;  %v1795_v53 = vsel %vm3659_vm12, %v1793_v28, %v1794_v48  ;;  %v1796_v42 = vrot.slane %v1794_v48, 4  ;;  %v1714_v62 = vld [vmem:[%s3062_s28 + $0x60] sm:$0x3]  ;;  %v2831_v63 = vcombine.low %v1943_v26, %v1944_v16 }
  0xa8   : > { %v245_v5 = vld [vmem:[%s3062_s28 + $0x50] sm:$0xf]  ;;  %v2958_v18 = vld [vmem:[#allocation2 + $0x14] ss:$8 sps:$4 sm:$0xff]   ;;  %v4063_v51 = vrot.slane %v652_v41, 4  ;;  %v2820_v30 = vrot.slane %v4026_v29, 9  ;;  %1057 = vrot.lane.b32.xlu0 %v3956_v58, %s3002_s8 }
  0xa9   : > { %v1525_v20 = vrot.slane %v1523_v24, 5  ;;  %1915 = vst.msk [vmem:[#allocation2 + $0x34] sm:$0xf] %vm261_vm9, %v1795_v53  ;;  %278 = vst.msk [vmem:[#allocation2 + $0x80] sm:$0xf] %vm261_vm9, %v245_v5  ;;  %v1528_v15 = vrot.slane %v1526_v59, 6  ;;  %v1798_v31 = vsel %vm3659_vm12, %v1796_v42, %v1797_v47  ;;  %2872 = vmatprep.mubr.msk.bf16.mxu0 %vm2197_vm0, %v2958_v18  ;;  %1591 = vrot.lane.b32.xlu1 %v3976_v14, %s3004_s14 }
  0xaa   : > { %1106 = vst.msk [vmem:[#allocation2 + $0x20] sm:$0xf] %vm1101_vm14, %v1014_v6  ;;  %v1533_v27 = vshrl.u32 %v4029_v17, 16  ;;  %v332_v43 = vld [vmem:[%s3062_s28 + $0x98] sm:$0xf]  ;;  %v1514_v28 = vshrl.u32 %v4036_v22, 16  ;;  %2287 = vmatmul.mubr.bf16.gmra.mxu0 %v2831_v63  ;;  %v1376_v58 = vor.u32 %v4057_v11, %v4050_v45  ;;  %v1570_v48 = vpop.permute.xlu0 %1569  ;;  %v704_v47 = vpop.permute.xlu1 %703  ;;  %v4114_v53 = vsel %vm3064_vm3, %v996_v10, %v4594_v35 }
  0xab   : > { %1663 = vst.msk [vmem:[#allocation2 + $0x28] sm:$0xf] %vm1657_vm15, %v1572_v54  ;;  %v1517_v39 = vshll.u32 %v4036_v22, 16  ;;  %v1830_v33 = vrot.slane %v4039_v40, 6  ;;  %v1833_v41 = vrot.slane %v4042_v2, 6  ;;  %v1387_v29 = vrot.slane %v4055_v38, 4 }
  0xac   : > { %1916 = vst.msk [vmem:[#allocation2 + $0x3c] sm:$0xf] %vm261_vm9, %v1798_v31  ;;  %v258_v36 = vld [vmem:[%s3062_s28 + $0x90] sm:$0xf]  ;;  %v1536_v24 = vshll.u32 %v4029_v17, 16  ;;  %v1836_v59 = vrot.slane %v1714_v62, 6  ;;  %v668_v17 = vsel %vm3109_vm7, %v4033_v57, %v3994_v4  ;;  %v4116_v42 = vor.u32 %v1528_v15, %v1525_v20  ;;  %1589 = vrot.lane.b32.xlu0 %v3981_v52, %s3004_s14 }
  0xad   : > { %291 = vst.msk [vmem:[#allocation2 + $0xe8] sm:$0xf] %vm261_vm9, %v258_v36  ;;  %v257_v22 = vld [vmem:[%s3062_s28 + $0x8c] sm:$0xf]  ;;  %v675_v2 = vshll.u32 %v332_v43, 16  ;;  %v679_v0 = vshrl.u32 %v332_v43, 16  ;;  %1615 = vrot.lane.b32.xlu1 %v3991_v49, %s3004_s14  ;;  %v658_v52 = vsel %vm3109_vm7, %v4063_v51, %v3926_v32  ;;  %v4145_v20 = vsel %vm3064_vm3, %v2820_v30, %v994_v19 }
  0xae   : > { %v1832_v14 = vrot.slane %v1830_v33, 4  ;;  %v1835_v16 = vrot.slane %v1833_v41, 4  ;;  %290 = vst.msk [vmem:[#allocation2 + $0xe0] sm:$0xf] %vm261_vm9, %v257_v22  ;;  %v4605_v45 = vrot.slane %v3270_v8, 5  ;;  %v4125_v8 = vrot.slane %v1514_v28, 5  ;;  %v702_v28 = vpop.permute.xlu0 %701  ;;  %v728_v37 = vpop.permute.xlu1 %727 }
  0xaf   : > { %1662 = vst.msk [vmem:[#allocation2 + $0x20] sm:$0xf] %vm1657_vm15, %v1570_v48  ;;  %v4119_v62 = vld [vmem:[%s3062_s28 + $0x9c] sm:$0x1]  ;;  %v1700_v5 = vld [vmem:[%s3062_s28 + $0x28] sm:$0xc]  ;;  %v4161_v19 = vsel %vm3130_vm8, %v1387_v29, %v3322_v12 }
  0xb0   : > { %793 = vst.msk [vmem:[#allocation2 + $0x38] sm:$0xf] %vm785_vm13, %v704_v47  ;;  %v4108_v11 = vsel %vm3064_vm3, %v957_v61, %v4605_v45  ;;  %v1701_v6 = vld [vmem:[%s3062_s28 + $0x2c] sm:$0xf]  ;;  %v4127_v61 = vrot.slane %v1517_v39, 6  ;;  %v1834_v10 = vsel %vm3659_vm12, %v1832_v14, %v1833_v41  ;;  %v1837_v26 = vsel %vm3659_vm12, %v1835_v16, %v1836_v59  ;;  %1613 = vrot.lane.b32.xlu0 %v3985_v60, %s3004_s14 }
  0xb1   : > { %v1702_v18 = vld [vmem:[%s3062_s28 + $0x30] sm:$0xf]  ;;  %v1715_v54 = vld [vmem:[%s3062_s28 + $0x64] sm:$0xc]  ;;  %v4147_v63 = vrot.slane %v1533_v27, 5  ;;  %v4149_v15 = vrot.slane %v1536_v24, 6  ;;  %723 = vrot.lane.b32.xlu1 %v536_v56, %s3003_s11 }
  0xb2   : > { %1927 = vst.msk [vmem:[#allocation2 + $0x94] sm:$0xf] %vm261_vm9, %v1834_v10  ;;  %1928 = vst.msk [vmem:[#allocation2 + $0x9c] sm:$0xf] %vm261_vm9, %v1837_v26  ;;  %v4154_v49 = vld [vmem:[%s3062_s28 + $0x98] sm:$0xf]  ;;  %v1520_v47 = vor.u32 %v4127_v61, %v4125_v8  ;;  %v726_v26 = vpop.permute.xlu0 %725 }
  0xb3   : > { %v1716_v31 = vld [vmem:[%s3062_s28 + $0x68] sm:$0xf]  ;;  %v1717_v43 = vld [vmem:[%s3062_s28 + $0x6c] sm:$0xf]  ;;  %v4163_v30 = vrot.slane %v1376_v58, 4  ;;  %v4165_v27 = vrot.slane %v675_v2, 5 }
  0xb4   : > { %v4167_v39 = vrot.slane %v679_v0, 4  ;;  %v1703_v41 = vld [vmem:[%s3062_s28 + $0x34] sm:$0xf]  ;;  %792 = vst.msk [vmem:[#allocation2 + $0x30] sm:$0xf] %vm785_vm13, %v702_v28  ;;  %v2823_v36 = vrot.slane %v1700_v5, 10  ;;  %721 = vrot.lane.b32.xlu0 %v526_v50, %s3003_s11 }
  0xb5   : > { %805 = vst.msk [vmem:[#allocation2 + $0x98] sm:$0xf] %vm785_vm13, %v728_v37  ;;  %v1801_v24 = vrot.slane %v1701_v6, 6  ;;  %v1804_v59 = vrot.slane %v1702_v18, 6  ;;  %v2826_v22 = vrot.slane %v1715_v54, 10  ;;  %v1946_v58 = vld [vmem:[#allocation2 + $0x28] sm:$0xff]  ;;  %747 = vrot.lane.b32.xlu1 %v668_v17, %s3003_s11 }
  0xb6   : > { %v4173_v12 = vld [vmem:[%s3062_s28 + $0x38] sm:$0x3]  ;;  %v1718_v29 = vld [vmem:[%s3062_s28 + $0x70] sm:$0xf]  ;;  %v1531_v48 = vrot.slane %v4116_v42, 4  ;;  %v685_v2 = vshll.u32 %v4119_v62, 16  ;;  %v682_v55 = vor.u32 %v4167_v39, %v4165_v27 }
  0xb7   : > { %v1840_v0 = vrot.slane %v1716_v31, 6  ;;  %v4183_v14 = vld [vmem:[%s3062_s28 + $0x74] sm:$0x3]  ;;  %v1802_v60 = vsel %vm3659_vm12, %v2823_v36, %v1801_v24  ;;  %v1803_v16 = vrot.slane %v1801_v24, 4  ;;  %v1843_v45 = vrot.slane %v1717_v43, 6  ;;  %v1945_v18 = vld [vmem:[#allocation2 + $0x20] sm:$0xff]  ;;  %v1020_v31 = vpop.permute.xlu1 %1019 }
  0xb8   : > { %v1806_v5 = vrot.slane %v1804_v59, 4  ;;  %v1705_v6 = vld [vmem:[%s3062_s28 + $0x3c] sm:$0xc]  ;;  %v1706_v10 = vld [vmem:[%s3062_s28 + $0x40] sm:$0xf]  ;;  %v4199_v44 = vrot.slane %v669_v13, 4  ;;  %v2833_v36 = vcombine.low %v1945_v18, %v1946_v58  ;;  %745 = vrot.lane.b32.xlu0 %v658_v52, %s3003_s11 }
  0xb9   : > { %v2960_v54 = vld [vmem:[#allocation2 + $0x24] ss:$8 sps:$4 sm:$0xff]   ;;  %v1543_v56 = vshrl.u32 %v4154_v49, 16  ;;  %1917 = vst.msk [vmem:[#allocation2 + $0x44] sm:$0xf] %vm261_vm9, %v1802_v60  ;;  %v1841_v43 = vsel %vm3659_vm12, %v2826_v22, %v1840_v0  ;;  %v1805_v34 = vsel %vm3659_vm12, %v1803_v16, %v1804_v59  ;;  %v1842_v13 = vrot.slane %v1840_v0, 4  ;;  %1039 = vrot.lane.b32.xlu1 %v4108_v11, %s3002_s8 }
  0xba   : > { %v4206_v28 = vld [vmem:[%s3062_s28 + $0x44] sm:$0xf]  ;;  %v1720_v37 = vld [vmem:[%s3062_s28 + $0x78] sm:$0xc]  ;;  %804 = vst.msk [vmem:[#allocation2 + $0x90] sm:$0xf] %vm785_vm13, %v726_v26  ;;  %2873 = vmatprep.mubr.msk.bf16.mxu0 %vm2197_vm0, %v2960_v54  ;;  %v1018_v26 = vpop.permute.xlu0 %1017  ;;  %v672_v8 = vor.u32 %v4199_v44, %v3994_v4 }
  0xbb   : > { %1109 = vst.msk [vmem:[#allocation2 + $0x38] sm:$0xf] %vm1101_vm14, %v1020_v31  ;;  %v1807_v24 = vrot.slane %v1703_v41, 6  ;;  %v1721_v60 = vld [vmem:[%s3062_s28 + $0x7c] sm:$0xf]  ;;  %v1546_v59 = vshll.u32 %v4154_v49, 16  ;;  %2295 = vmatmul.mubr.bf16.gmra.mxu0 %v2833_v36  ;;  %v1844_v21 = vsel %vm3659_vm12, %v1842_v13, %v1843_v45  ;;  %v1044_v18 = vpop.permute.xlu1 %1043 }
  0xbc   : > { %1929 = vst.msk [vmem:[#allocation2 + $0xa4] sm:$0xf] %vm261_vm9, %v1841_v43  ;;  %v4216_v35 = vld [vmem:[%s3062_s28 + $0x80] sm:$0xf]  ;;  %1918 = vst.msk [vmem:[#allocation2 + $0x4c] sm:$0xf] %vm261_vm9, %v1805_v34  ;;  %1037 = vrot.lane.b32.xlu0 %v4067_v23, %s3002_s8 }
  0xbd   : > { %v1810_v41 = vrot.slane %v4173_v12, 6  ;;  %v1845_v22 = vrot.slane %v1843_v45, 4  ;;  %v1846_v58 = vrot.slane %v1718_v29, 6  ;;  %v1708_v0 = vld [vmem:[%s3062_s28 + $0x48] sm:$0xf]  ;;  %v1808_v7 = vsel %vm3659_vm12, %v1806_v5, %v1807_v24  ;;  %1063 = vrot.lane.b32.xlu1 %v4114_v53, %s3002_s8 }
  0xbe   : > { %v1809_v50 = vrot.slane %v1807_v24, 4  ;;  %v1849_v12 = vrot.slane %v4183_v14, 6  ;;  %v4241_v29 = vld [vmem:[%s3062_s28 + $0x4c] sm:$0x3]  ;;  %v1723_v16 = vld [vmem:[%s3062_s28 + $0x84] sm:$0xf] }
  0xbf   : > { %1930 = vst.msk [vmem:[#allocation2 + $0xac] sm:$0xf] %vm261_vm9, %v1844_v21  ;;  %1919 = vst.msk [vmem:[#allocation2 + $0x54] sm:$0xf] %vm261_vm9, %v1808_v7  ;;  %v1847_v57 = vsel %vm3659_vm12, %v1845_v22, %v1846_v58  ;;  %v1848_v17 = vrot.slane %v1846_v58, 4  ;;  %v2824_v45 = vrot.slane %v1705_v6, 10  ;;  %v1042_v22 = vpop.permute.xlu0 %1041 }
  0xc0   : > { %v1814_v54 = vrot.slane %v1706_v10, 6  ;;  %v4249_v5 = vld [vmem:[%s3062_s28 + $0x88] sm:$0x3]  ;;  %1108 = vst.msk [vmem:[#allocation2 + $0x30] sm:$0xf] %vm1101_vm14, %v1018_v26  ;;  %v1811_v14 = vsel %vm3659_vm12, %v1809_v50, %v1810_v41  ;;  %v1817_v31 = vrot.slane %v4206_v28, 6  ;;  %1061 = vrot.lane.b32.xlu0 %v4145_v20, %s3002_s8 }
  0xc1   : > { %1121 = vst.msk [vmem:[#allocation2 + $0x98] sm:$0xf] %vm1101_vm14, %v1044_v18  ;;  %v2827_v43 = vrot.slane %v1720_v37, 10  ;;  %v1853_v36 = vrot.slane %v1721_v60, 6  ;;  %v1711_v34 = vld [vmem:[%s3062_s28 + $0x54] sm:$0xf]  ;;  %v1850_v6 = vsel %vm3659_vm12, %v1848_v17, %v1849_v12  ;;  %1595 = vrot.lane.b32.xlu1 %v4161_v19, %s3004_s14 }
  0xc2   : > { %1931 = vst.msk [vmem:[#allocation2 + $0xb4] sm:$0xf] %vm261_vm9, %v1847_v57  ;;  %1920 = vst.msk [vmem:[#allocation2 + $0x5c] sm:$0xf] %vm261_vm9, %v1811_v14  ;;  %v1815_v10 = vsel %vm3659_vm12, %v2824_v45, %v1814_v54  ;;  %v1816_v28 = vrot.slane %v1814_v54, 4  ;;  %v1856_v37 = vrot.slane %v4216_v35, 6  ;;  %v1576_v35 = vpop.permute.xlu1 %1575 }
  0xc3   : > { %v1710_v13 = vld [vmem:[%s3062_s28 + $0x50] sm:$0xc]  ;;  %1932 = vst.msk [vmem:[#allocation2 + $0xbc] sm:$0xf] %vm261_vm9, %v1850_v6  ;;  %1921 = vst.msk [vmem:[#allocation2 + $0x64] sm:$0xf] %vm261_vm9, %v1815_v10  ;;  %v1854_v32 = vsel %vm3659_vm12, %v2827_v43, %v1853_v36  ;;  %v4314_v10 = vor.u32 %v4149_v15, %v4147_v63  ;;  %v1386_v63 = vsel %vm3130_vm8, %v4163_v30, %v4055_v38 }
  0xc4   : > { %v1726_v24 = vld [vmem:[%s3062_s28 + $0x90] sm:$0xf]  ;;  %v1855_v51 = vrot.slane %v1853_v36, 4  ;;  %v1819_v52 = vrot.slane %v1817_v31, 4  ;;  %v1820_v60 = vrot.slane %v1708_v0, 6  ;;  %v1818_v58 = vsel %vm3659_vm12, %v1816_v28, %v1817_v31  ;;  %v1574_v36 = vpop.permute.xlu0 %1573  ;;  %1593 = vrot.lane.b32.xlu0 %v1386_v63, %s3004_s14 }
  0xc5   : > { %v1725_v41 = vld [vmem:[%s3062_s28 + $0x8c] sm:$0xc]  ;;  %1933 = vst.msk [vmem:[#allocation2 + $0xc4] sm:$0xf] %vm261_vm9, %v1854_v32  ;;  %v1823_v11 = vrot.slane %v4241_v29, 6  ;;  %v1858_v21 = vrot.slane %v1856_v37, 4  ;;  %v1540_v19 = vsel %vm3130_vm8, %v1531_v48, %v4314_v10 }
  0xc6   : > { %v1859_v7 = vrot.slane %v1723_v16, 6  ;;  %v4284_v50 = vld [vmem:[%s3062_s28 + $0x94] sm:$0xf]  ;;  %1120 = vst.msk [vmem:[#allocation2 + $0x90] sm:$0xf] %vm1101_vm14, %v1042_v22  ;;  %v1857_v0 = vsel %vm3659_vm12, %v1855_v51, %v1856_v37  ;;  %v1821_v12 = vsel %vm3659_vm12, %v1819_v52, %v1820_v60  ;;  %v1822_v26 = vrot.slane %v1820_v60, 4  ;;  %v1600_v6 = vpop.permute.xlu1 %1599  ;;  %1619 = vrot.lane.b32.xlu1 %v1540_v19, %s3004_s14 }
  0xc7   : > { %1665 = vst.msk [vmem:[#allocation2 + $0x38] sm:$0xf] %vm1657_vm15, %v1576_v35  ;;  %v1862_v29 = vrot.slane %v4249_v5, 6  ;;  %v260_v18 = vld [vmem:[%s3062_s28 + $0x98] sm:$0xf]  ;;  %v2825_v45 = vrot.slane %v1710_v13, 10 }
  0xc8   : > { %1922 = vst.msk [vmem:[#allocation2 + $0x6c] sm:$0xf] %vm261_vm9, %v1818_v58  ;;  %v4298_v16 = vld [vmem:[%s3062_s28 + $0x98] sm:$0xf]  ;;  %1934 = vst.msk [vmem:[#allocation2 + $0xcc] sm:$0xf] %vm261_vm9, %v1857_v0  ;;  %v1860_v57 = vsel %vm3659_vm12, %v1858_v21, %v1859_v7  ;;  %v1824_v23 = vsel %vm3659_vm12, %v1822_v26, %v1823_v11 }
  0xc9   : > { %1923 = vst.msk [vmem:[#allocation2 + $0x74] sm:$0xf] %vm261_vm9, %v1821_v12  ;;  %v1861_v17 = vrot.slane %v1859_v7, 4  ;;  %293 = vst.msk [vmem:[#allocation2 + $0xf8] sm:$0xf] %vm261_vm9, %v260_v18  ;;  %v1827_v54 = vrot.slane %v1711_v34, 6 }
  0xca   : > { %1935 = vst.msk [vmem:[#allocation2 + $0xd4] sm:$0xf] %vm261_vm9, %v1860_v57  ;;  %v259_v5 = vld [vmem:[%s3062_s28 + $0x94] sm:$0xf]  ;;  %v2828_v14 = vrot.slane %v1725_v41, 10  ;;  %v1866_v31 = vrot.slane %v1726_v24, 6  ;;  %v708_v44 = vpop.permute.xlu1 %707 }
  0xcb   : > { %v1869_v43 = vrot.slane %v4284_v50, 6  ;;  %1924 = vst.msk [vmem:[#allocation2 + $0x7c] sm:$0xf] %vm261_vm9, %v1824_v23  ;;  %v1863_v53 = vsel %vm3659_vm12, %v1861_v17, %v1862_v29  ;;  %292 = vst.msk [vmem:[#allocation2 + $0xf0] sm:$0xf] %vm261_vm9, %v259_v5  ;;  %v1828_v34 = vsel %vm3659_vm12, %v2825_v45, %v1827_v54  ;;  %v1829_v28 = vrot.slane %v1827_v54, 4 }
  0xcc   : > { %1664 = vst.msk [vmem:[#allocation2 + $0x30] sm:$0xf] %vm1657_vm15, %v1574_v36  ;;  %1677 = vst.msk [vmem:[#allocation2 + $0x98] sm:$0xf] %vm1657_vm15, %v1600_v6  ;;  %v1521_v15 = vrot.slane %v1520_v47, 4  ;;  %v1867_v13 = vsel %vm3659_vm12, %v2828_v14, %v1866_v31  ;;  %v1868_v24 = vrot.slane %v1866_v31, 4 }
  0xcd   : > { %v1173_v37 = vld [vmem:[%s3062_s28 + $0x9c] sm:$0x3]  ;;  %1936 = vst.msk [vmem:[#allocation2 + $0xdc] sm:$0xf] %vm261_vm9, %v1863_v53  ;;  %1925 = vst.msk [vmem:[#allocation2 + $0x84] sm:$0xf] %vm261_vm9, %v1828_v34  ;;  %v1831_v47 = vsel %vm3659_vm12, %v1829_v28, %v1830_v33 }
  0xce   : > { %v687_v38 = vrot.slane %v685_v2, 5  ;;  %v857_v61 = vld [vmem:[%s3062_s28 + $0x9c] sm:$0x1]  ;;  %v1000_v30 = vrot.slane %v4298_v16, 5  ;;  %1937 = vst.msk [vmem:[#allocation2 + $0xe4] sm:$0xf] %vm261_vm9, %v1867_v13  ;;  %v1870_v40 = vsel %vm3659_vm12, %v1868_v24, %v1869_v43  ;;  %v1598_v2 = vpop.permute.xlu0 %1597  ;;  %v732_v7 = vpop.permute.xlu1 %731 }
  0xcf   : > { %v683_v62 = vrot.slane %v682_v55, 4  ;;  %v1545_v4 = vrot.slane %v1543_v56, 5  ;;  %v1548_v20 = vrot.slane %v1546_v59, 6  ;;  %1926 = vst.msk [vmem:[#allocation2 + $0x8c] sm:$0xf] %vm261_vm9, %v1831_v47  ;;  %v1553_v39 = vshrl.u32 %v1173_v37, 16 }
  0xd0   : > { %v1728_v33 = vld [vmem:[%s3062_s28 + $0x98] sm:$0xf]  ;;  %v1556_v55 = vshll.u32 %v1173_v37, 16  ;;  %1938 = vst.msk [vmem:[#allocation2 + $0xec] sm:$0xf] %vm261_vm9, %v1870_v40  ;;  %v1530_v56 = vsel %vm3130_vm8, %v1521_v15, %v4116_v42  ;;  %v1003_v51 = vrot.slane %v857_v61, 5 }
  0xd1   : > { %v1872_v49 = vrot.slane %v1728_v33, 6  ;;  %1676 = vst.msk [vmem:[#allocation2 + $0x90] sm:$0xf] %vm1657_vm15, %v1598_v2  ;;  %v1729_v59 = vld [vmem:[%s3062_s28 + $0x9c] sm:$0x3]  ;;  %v1871_v52 = vrot.slane %v1869_v43, 4  ;;  %v688_v41 = vsel %vm3109_vm7, %v683_v62, %v687_v38  ;;  %v1549_v58 = vor.u32 %v1548_v20, %v1545_v4  ;;  %1617 = vrot.lane.b32.xlu0 %v1530_v56, %s3004_s14 }
  0xd2   : > { %795 = vst.msk [vmem:[#allocation2 + $0x48] sm:$0xf] %vm785_vm13, %v708_v44  ;;  %v1948_v32 = vld [vmem:[#allocation2 + $0x38] sm:$0xff]  ;;  %v1875_v60 = vrot.slane %v1729_v59, 6  ;;  %v673_v22 = vrot.slane %v672_v8, 4  ;;  %v1002_v35 = vrot.slane %v1000_v30, 4  ;;  %v706_v11 = vpop.permute.xlu0 %705  ;;  %751 = vrot.lane.b32.xlu1 %v688_v41, %s3003_s11  ;;  %v1024_v23 = vpop.permute.xlu1 %1023 }
  0xd3   : > { %v1874_v48 = vrot.slane %v1872_v49, 4  ;;  %v1947_v42 = vld [vmem:[#allocation2 + $0x30] sm:$0xff]  ;;  %v1555_v50 = vrot.slane %v1553_v39, 5  ;;  %v1558_v0 = vrot.slane %v1556_v55, 6  ;;  %v1873_v12 = vsel %vm3659_vm12, %v1871_v52, %v1872_v49  ;;  %794 = vst.msk [vmem:[#allocation2 + $0x40] sm:$0xf] %vm785_vm13, %v706_v11 }
  0xd4   : > { %v2962_v21 = vld [vmem:[#allocation2 + $0x34] ss:$8 sps:$4 sm:$0xff]   ;;  %807 = vst.msk [vmem:[#allocation2 + $0xa8] sm:$0xf] %vm785_vm13, %v732_v7  ;;  %v2835_v29 = vcombine.low %v1947_v42, %v1948_v32  ;;  %v678_v25 = vsel %vm3109_vm7, %v673_v22, %v4165_v27  ;;  %v4606_v18 = vrot.slane %v4015_v9, 5  ;;  %v1004_v5 = vsel %vm3064_vm3, %v1002_v35, %v1003_v51 }
  0xd5   : > { %v1876_v26 = vsel %vm3659_vm12, %v1874_v48, %v1875_v60  ;;  %1939 = vst.msk [vmem:[#allocation2 + $0xf4] sm:$0xf] %vm261_vm9, %v1873_v12  ;;  %2874 = vmatprep.mubr.msk.bf16.mxu0 %vm2197_vm0, %v2962_v21  ;;  %v2966_v54 = vld [vmem:[#allocation2 + $0x94] ss:$8 sps:$4 sm:$0xff]   ;;  %v1551_v14 = vrot.slane %v1549_v58, 4  ;;  %v1559_v31 = vor.u32 %v1558_v0, %v1555_v50  ;;  %749 = vrot.lane.b32.xlu0 %v678_v25, %s3003_s11  ;;  %v1541_v9 = vrot.slane %v4314_v10, 4 }
  0xd6   : > { %1940 = vst.msk [vmem:[#allocation2 + $0xfc] sm:$0xf] %vm261_vm9, %v1876_v26  ;;  %2303 = vmatmul.mubr.bf16.gmra.mxu0 %v2835_v29  ;;  %v999_v57 = vrot.slane %v4606_v18, 4  ;;  %v730_v17 = vpop.permute.xlu0 %729  ;;  %2880 = vmatprep.mubr.msk.bf16.mxu1 %vm2197_vm0, %v2966_v54  ;;  %v1048_v43 = vpop.permute.xlu1 %1047  ;;  %v2967_v37 = vld [vmem:[#allocation2 + $0x44] ss:$8 sps:$4 sm:$0xff]   ;;  %vm2677_vm7 = vcmask 1042434  }
  0xd7   : > { %806 = vst.msk [vmem:[#allocation2 + $0xa0] sm:$0xf] %vm785_vm13, %v730_v17  ;;  %1067 = vrot.lane.b32.xlu1 %v1004_v5, %s3002_s8  ;;  %v1560_v36 = vsel %vm3130_vm8, %v1551_v14, %v1559_v31  ;;  %v1550_v16 = vsel %vm3130_vm8, %v1541_v9, %v1549_v58  ;;  %2875 = vmatprep.mubr.msk.bf16.mxu0 %vm2197_vm0, %v2967_v37  ;;  %v2971_v59 = vld [vmem:[#allocation2 + $0x54] ss:$8 sps:$4 sm:$0xff]   ;;  %v2975_v18 = vld [vmem:[#allocation2 + $0x64] ss:$8 sps:$4 sm:$0xff]  }
  0xd8   : > { %v2964_v45 = vld [vmem:[#allocation2 + $0x90] ss:$8 sps:$4 sm:$0xff]   ;;  %1111 = vst.msk [vmem:[#allocation2 + $0x48] sm:$0xf] %vm1101_vm14, %v1024_v23  ;;  %v1001_v46 = vsel %vm3064_vm3, %v999_v57, %v1000_v30  ;;  %1123 = vst.msk [vmem:[#allocation2 + $0xa8] sm:$0xf] %vm1101_vm14, %v1048_v43 }
  0xd9   : > { %2351 = vmatmul.mubr.bf16.vlgmr.msra.gmra.mxu1 %v2964_v45  ;;  %1065 = vrot.lane.b32.xlu0 %v1001_v46, %s3002_s8  ;;  %v2969_v30 = vld [vmem:[#allocation2 + $0xa4] ss:$8 sps:$4 sm:$0xff]   ;;  %v2973_v41 = vld [vmem:[#allocation2 + $0xb4] ss:$8 sps:$4 sm:$0xff]   ;;  %vm2533_vm3 = vcmask 392192   ;;  %vm2679_vm8 = vcmask 1043459  }
  0xda   : > { %v1022_v27 = vpop.permute.xlu0 %1021  ;;  %v1580_v6 = vpop.permute.xlu1 %1579  ;;  %2881 = vmatprep.mubr.msk.bf16.mxu1 %vm2197_vm0, %v2969_v30  ;;  %v2977_v5 = vld [vmem:[#allocation2 + $0xc4] ss:$8 sps:$4 sm:$0xff]   ;;  %vm2681_vm9 = vcmask 1044484   ;;  %vm2687_vm12 = vcmask 1047559   ;;  %s2812_s8 = sshll.u32 %s4612_s19, 3 }
  0xdb   : > { %1110 = vst.msk [vmem:[#allocation2 + $0x40] sm:$0xf] %vm1101_vm14, %v1022_v27  ;;  %1623 = vrot.lane.b32.xlu1 %v1560_v36, %s3004_s14  ;;  %s227_s13 = scalar_lea.vmem %s4592_s5, %s2812_s8 }
  0xdc   : > { %1667 = vst.msk [vmem:[#allocation2 + $0x48] sm:$0xf] %vm1657_vm15, %v1580_v6 }
  0xdd   : > { %1621 = vrot.lane.b32.xlu0 %v1550_v16, %s3004_s14 }
  0xde   : > { %v1046_v3 = vpop.permute.xlu0 %1045  ;;  %v1604_v53 = vpop.permute.xlu1 %1603 }
  0xdf   : > { %1122 = vst.msk [vmem:[#allocation2 + $0xa0] sm:$0xf] %vm1101_vm14, %v1046_v3 }
  0xe0   : > { %1679 = vst.msk [vmem:[#allocation2 + $0xa8] sm:$0xf] %vm1657_vm15, %v1604_v53 }
  0xe2   : > { %v1578_v10 = vpop.permute.xlu0 %1577  ;;  %v712_v28 = vpop.permute.xlu1 %711 }
  0xe3   : > { %1666 = vst.msk [vmem:[#allocation2 + $0x40] sm:$0xf] %vm1657_vm15, %v1578_v10  ;;  %v1950_v1 = vld [vmem:[#allocation2 + $0x48] sm:$0xff] }
  0xe4   : > { %797 = vst.msk [vmem:[#allocation2 + $0x58] sm:$0xf] %vm785_vm13, %v712_v28  ;;  %v2979_v28 = vld [vmem:[#allocation2 + $0x74] ss:$8 sps:$4 sm:$0xff]  }
  0xe6   : > { %v1602_v34 = vpop.permute.xlu0 %1601  ;;  %v736_v13 = vpop.permute.xlu1 %735 }
  0xe7   : > { %1678 = vst.msk [vmem:[#allocation2 + $0xa0] sm:$0xf] %vm1657_vm15, %v1602_v34  ;;  %v1962_v38 = vld [vmem:[#allocation2 + $0xa8] sm:$0xff] }
  0xe8   : > { %809 = vst.msk [vmem:[#allocation2 + $0xb8] sm:$0xf] %vm785_vm13, %v736_v13 }
  0xea   : > { %v710_v63 = vpop.permute.xlu0 %709  ;;  %v1949_v15 = vld [vmem:[#allocation2 + $0x40] sm:$0xff]  ;;  %v1028_v47 = vpop.permute.xlu1 %1027 }
  0xeb   : > { %796 = vst.msk [vmem:[#allocation2 + $0x50] sm:$0xf] %vm785_vm13, %v710_v63  ;;  %v2837_v24 = vcombine.low %v1949_v15, %v1950_v1 }
  0xec   : > { %1113 = vst.msk [vmem:[#allocation2 + $0x58] sm:$0xf] %vm1101_vm14, %v1028_v47 }
  0xed   : > { %2311 = vmatmul.mubr.bf16.gmra.mxu0 %v2837_v24  ;;  %v2981_v24 = vld [vmem:[#allocation2 + $0xd4] ss:$8 sps:$4 sm:$0xff]  }
  0xee   : > { %v734_v8 = vpop.permute.xlu0 %733  ;;  %v1961_v61 = vld [vmem:[#allocation2 + $0xa0] sm:$0xff]  ;;  %v1052_v20 = vpop.permute.xlu1 %1051  ;;  %2876 = vmatprep.mubr.msk.bf16.mxu0 %vm2197_vm0, %v2971_v59 }
  0xef   : > { %808 = vst.msk [vmem:[#allocation2 + $0xb0] sm:$0xf] %vm785_vm13, %v734_v8  ;;  %v2849_v62 = vcombine.low %v1961_v61, %v1962_v38 }
  0xf0   : > { %1125 = vst.msk [vmem:[#allocation2 + $0xb8] sm:$0xf] %vm1101_vm14, %v1052_v20 }
  0xf1   : > { %2359 = vmatmul.mubr.bf16.gmra.mxu1 %v2849_v62 }
  0xf2   : > { %v1026_v4 = vpop.permute.xlu0 %1025  ;;  %v1584_v33 = vpop.permute.xlu1 %1583  ;;  %2882 = vmatprep.mubr.msk.bf16.mxu1 %vm2197_vm0, %v2973_v41  ;;  %v2987_v41 = vld [vmem:[#allocation2 + $0xf4] ss:$8 sps:$4 sm:$0xff]  }
  0xf3   : > { %1112 = vst.msk [vmem:[#allocation2 + $0x50] sm:$0xf] %vm1101_vm14, %v1026_v4 }
  0xf4   : > { %1669 = vst.msk [vmem:[#allocation2 + $0x58] sm:$0xf] %vm1657_vm15, %v1584_v33 }
  0xf6   : > { %v1050_v40 = vpop.permute.xlu0 %1049  ;;  %v1608_v44 = vpop.permute.xlu1 %1607 }
  0xf7   : > { %1124 = vst.msk [vmem:[#allocation2 + $0xb0] sm:$0xf] %vm1101_vm14, %v1050_v40 }
  0xf8   : > { %1681 = vst.msk [vmem:[#allocation2 + $0xb8] sm:$0xf] %vm1657_vm15, %v1608_v44 }
  0xfa   : > { %v1582_v2 = vpop.permute.xlu0 %1581  ;;  %v716_v39 = vpop.permute.xlu1 %715 }
  0xfb   : > { %1668 = vst.msk [vmem:[#allocation2 + $0x50] sm:$0xf] %vm1657_vm15, %v1582_v2  ;;  %v1952_v55 = vld [vmem:[#allocation2 + $0x58] sm:$0xff] }
  0xfc   : > { %799 = vst.msk [vmem:[#allocation2 + $0x68] sm:$0xf] %vm785_vm13, %v716_v39  ;;  %v2983_v39 = vld [vmem:[#allocation2 + $0x84] ss:$8 sps:$4 sm:$0xff]  }
  0xfe   : > { %v1606_v19 = vpop.permute.xlu0 %1605  ;;  %v740_v32 = vpop.permute.xlu1 %739 }
  0xff   : > { %1680 = vst.msk [vmem:[#allocation2 + $0xb0] sm:$0xf] %vm1657_vm15, %v1606_v19  ;;  %v1964_v52 = vld [vmem:[#allocation2 + $0xb8] sm:$0xff] }
 0x100   : > { %811 = vst.msk [vmem:[#allocation2 + $0xc8] sm:$0xf] %vm785_vm13, %v740_v32 }
 0x102   : > { %v714_v49 = vpop.permute.xlu0 %713  ;;  %v1951_v56 = vld [vmem:[#allocation2 + $0x50] sm:$0xff]  ;;  %v1032_v22 = vpop.permute.xlu1 %1031 }
 0x103   : > { %798 = vst.msk [vmem:[#allocation2 + $0x60] sm:$0xf] %vm785_vm13, %v714_v49  ;;  %v2839_v51 = vcombine.low %v1951_v56, %v1952_v55 }
 0x104   : > { %1115 = vst.msk [vmem:[#allocation2 + $0x68] sm:$0xf] %vm1101_vm14, %v1032_v22 }
 0x105   : > { %2319 = vmatmul.mubr.bf16.gmra.mxu0 %v2839_v51  ;;  %v2985_v51 = vld [vmem:[#allocation2 + $0xe4] ss:$8 sps:$4 sm:$0xff]  }
 0x106   : > { %v738_v48 = vpop.permute.xlu0 %737  ;;  %v1963_v60 = vld [vmem:[#allocation2 + $0xb0] sm:$0xff]  ;;  %v1056_v11 = vpop.permute.xlu1 %1055  ;;  %2877 = vmatprep.mubr.msk.bf16.mxu0 %vm2197_vm0, %v2975_v18 }
 0x107   : > { %810 = vst.msk [vmem:[#allocation2 + $0xc0] sm:$0xf] %vm785_vm13, %v738_v48  ;;  %v2851_v35 = vcombine.low %v1963_v60, %v1964_v52 }
 0x108   : > { %1127 = vst.msk [vmem:[#allocation2 + $0xc8] sm:$0xf] %vm1101_vm14, %v1056_v11  ;;  %v4490_v11 = vld [vmem:[%s4589_s2] ss:$0 sm:$0xff] }
 0x109   : > { %2367 = vmatmul.mubr.bf16.gmra.mxu1 %v2851_v35  ;;  %v2478_v35 = vlaneseq }
 0x10a   : > { %v1030_v58 = vpop.permute.xlu0 %1029  ;;  %v1588_v21 = vpop.permute.xlu1 %1587  ;;  %2883 = vmatprep.mubr.msk.bf16.mxu1 %vm2197_vm0, %v2977_v5 }
 0x10b   : > { %1114 = vst.msk [vmem:[#allocation2 + $0x60] sm:$0xf] %vm1101_vm14, %v1030_v58  ;;  %v2484_v58 = vand.u32 127, %v2478_v35 }
 0x10c   : > { %1671 = vst.msk [vmem:[#allocation2 + $0x68] sm:$0xf] %vm1657_vm15, %v1588_v21 }
 0x10d   : > { %vm2485_vm1 = vcmp.ge.s32.totalorder %v2484_v58, 16  ;;  %vm2487_vm2 = vcmp.ge.s32.totalorder %v2484_v58, 32 }
 0x10e   : > { %v1054_v42 = vpop.permute.xlu0 %1053  ;;  %v1612_v50 = vpop.permute.xlu1 %1611 }
 0x10f   : > { %1126 = vst.msk [vmem:[#allocation2 + $0xc0] sm:$0xf] %vm1101_vm14, %v1054_v42 }
 0x110   : > { %1683 = vst.msk [vmem:[#allocation2 + $0xc8] sm:$0xf] %vm1657_vm15, %v1612_v50  ;;  %v2479_v50 = vshrl.u32 %v2478_v35, 7 }
 0x112   : > { %v1586_v7 = vpop.permute.xlu0 %1585  ;;  %v720_v12 = vpop.permute.xlu1 %719 }
 0x113   : > { %1670 = vst.msk [vmem:[#allocation2 + $0x60] sm:$0xf] %vm1657_vm15, %v1586_v7  ;;  %v1954_v26 = vld [vmem:[#allocation2 + $0x68] sm:$0xff] }
 0x114   : > { %801 = vst.msk [vmem:[#allocation2 + $0x78] sm:$0xf] %vm785_vm13, %v720_v12  ;;  %v3005_v12 = vmov 16  }
 0x116   : > { %v1610_v0 = vpop.permute.xlu0 %1609  ;;  %v744_v57 = vpop.permute.xlu1 %743 }
 0x117   : > { %1682 = vst.msk [vmem:[#allocation2 + $0xc0] sm:$0xf] %vm1657_vm15, %v1610_v0  ;;  %v1966_v45 = vld [vmem:[#allocation2 + $0xc8] sm:$0xff] }
 0x118   : > { %813 = vst.msk [vmem:[#allocation2 + $0xd8] sm:$0xf] %vm785_vm13, %v744_v57  ;;  %v2481_v57 = vadd.s32 16, %v2479_v50 }
 0x11a   : > { %v718_v29 = vpop.permute.xlu0 %717  ;;  %v1953_v25 = vld [vmem:[#allocation2 + $0x60] sm:$0xff]  ;;  %v1036_v14 = vpop.permute.xlu1 %1035 }
 0x11b   : > { %800 = vst.msk [vmem:[#allocation2 + $0x70] sm:$0xf] %vm785_vm13, %v718_v29  ;;  %v2841_v17 = vcombine.low %v1953_v25, %v1954_v26  ;;  %v2486_v26 = vsel %vm2485_vm1, 17, %v3005_v12  ;;  %v2991_v12 = vld [vmem:[%s4590_s3 + $0x8] sm:$0xff]  }
 0x11c   : > { %1117 = vst.msk [vmem:[#allocation2 + $0x78] sm:$0xf] %vm1101_vm14, %v1036_v14 }
 0x11d   : > { %2327 = vmatmul.mubr.bf16.gmra.mxu0 %v2841_v17 }
 0x11e   : > { %v742_v54 = vpop.permute.xlu0 %741  ;;  %v1965_v23 = vld [vmem:[#allocation2 + $0xc0] sm:$0xff]  ;;  %v1060_v9 = vpop.permute.xlu1 %1059  ;;  %2878 = vmatprep.mubr.msk.bf16.mxu0 %vm2197_vm0, %v2979_v28 }
 0x11f   : > { %812 = vst.msk [vmem:[#allocation2 + $0xd0] sm:$0xf] %vm785_vm13, %v742_v54  ;;  %v2853_v31 = vcombine.low %v1965_v23, %v1966_v45  ;;  %v2488_v45 = vsel %vm2487_vm2, 16, %v2486_v26 }
 0x120   : > { %1129 = vst.msk [vmem:[#allocation2 + $0xd8] sm:$0xf] %vm1101_vm14, %v1060_v9  ;;  %vm4497_vm4 = vcmp.lt.s32.totalorder %v2481_v57, %v2488_v45 }
 0x121   : > { %2375 = vmatmul.mubr.bf16.gmra.mxu1 %v2853_v31 }
 0x122   : > { %v1034_v46 = vpop.permute.xlu0 %1033  ;;  %v1592_v43 = vpop.permute.xlu1 %1591  ;;  %2884 = vmatprep.mubr.msk.bf16.mxu1 %vm2197_vm0, %v2981_v24 }
 0x123   : > { %1116 = vst.msk [vmem:[#allocation2 + $0x70] sm:$0xf] %vm1101_vm14, %v1034_v46 }
 0x124   : > { %1673 = vst.msk [vmem:[#allocation2 + $0x78] sm:$0xf] %vm1657_vm15, %v1592_v43 }
 0x126   : > { %v1058_v27 = vpop.permute.xlu0 %1057  ;;  %v1616_v16 = vpop.permute.xlu1 %1615 }
 0x127   : > { %1128 = vst.msk [vmem:[#allocation2 + $0xd0] sm:$0xf] %vm1101_vm14, %v1058_v27 }
 0x128   : > { %1685 = vst.msk [vmem:[#allocation2 + $0xd8] sm:$0xf] %vm1657_vm15, %v1616_v16 }
 0x12a   : > { %v1590_v36 = vpop.permute.xlu0 %1589  ;;  %v724_v6 = vpop.permute.xlu1 %723 }
 0x12b   : > { %1672 = vst.msk [vmem:[#allocation2 + $0x70] sm:$0xf] %vm1657_vm15, %v1590_v36  ;;  %v1956_v10 = vld [vmem:[#allocation2 + $0x78] sm:$0xff] }
 0x12c   : > { %803 = vst.msk [vmem:[#allocation2 + $0x88] sm:$0xf] %vm785_vm13, %v724_v6 }
 0x12e   : > { %v1614_v3 = vpop.permute.xlu0 %1613  ;;  %v748_v1 = vpop.permute.xlu1 %747 }
 0x12f   : > { %1684 = vst.msk [vmem:[#allocation2 + $0xd0] sm:$0xf] %vm1657_vm15, %v1614_v3  ;;  %v1968_v15 = vld [vmem:[#allocation2 + $0xd8] sm:$0xff] }
 0x130   : > { %815 = vst.msk [vmem:[#allocation2 + $0xe8] sm:$0xf] %vm785_vm13, %v748_v1 }
 0x132   : > { %v722_v53 = vpop.permute.xlu0 %721  ;;  %v1955_v34 = vld [vmem:[#allocation2 + $0x70] sm:$0xff]  ;;  %v1040_v38 = vpop.permute.xlu1 %1039 }
 0x133   : > { %802 = vst.msk [vmem:[#allocation2 + $0x80] sm:$0xf] %vm785_vm13, %v722_v53  ;;  %v2843_v63 = vcombine.low %v1955_v34, %v1956_v10 }
 0x134   : > { %1119 = vst.msk [vmem:[#allocation2 + $0x88] sm:$0xf] %vm1101_vm14, %v1040_v38 }
 0x135   : > { %2335 = vmatmul.mubr.bf16.gmra.mxu0 %v2843_v63 }
 0x136   : > { %v746_v37 = vpop.permute.xlu0 %745  ;;  %v1967_v13 = vld [vmem:[#allocation2 + $0xd0] sm:$0xff]  ;;  %v1064_v30 = vpop.permute.xlu1 %1063  ;;  %2879 = vmatprep.mubr.msk.bf16.mxu0 %vm2197_vm0, %v2983_v39 }
 0x137   : > { %814 = vst.msk [vmem:[#allocation2 + $0xe0] sm:$0xf] %vm785_vm13, %v746_v37  ;;  %v2855_v8 = vcombine.low %v1967_v13, %v1968_v15 }
 0x138   : > { %1131 = vst.msk [vmem:[#allocation2 + $0xe8] sm:$0xf] %vm1101_vm14, %v1064_v30  ;;  %v3006_v30 = vmov 0.0  }
 0x139   : > { %2383 = vmatmul.mubr.bf16.gmra.mxu1 %v2855_v8  ;;  %2899 = vmatprep.subr.bf16.mxu1 %v3006_v30 }
 0x13a   : > { %v1038_v61 = vpop.permute.xlu0 %1037  ;;  %v1596_v62 = vpop.permute.xlu1 %1595  ;;  %2885 = vmatprep.mubr.msk.bf16.mxu1 %vm2197_vm0, %v2985_v51 }
 0x13b   : > { %1118 = vst.msk [vmem:[#allocation2 + $0x80] sm:$0xf] %vm1101_vm14, %v1038_v61  ;;  %v2990_v61 = vld [vmem:[%s4590_s3 + $0x10] sm:$0xff]  }
 0x13c   : > { %1675 = vst.msk [vmem:[#allocation2 + $0x88] sm:$0xf] %vm1657_vm15, %v1596_v62  ;;  %2900 = vmatpush3.bf16.msra.mxu1 %v2990_v61 }
 0x13d   : > { %2901 = vmatprep.subr.bf16.mxu1 %v3006_v30 }
 0x13e   : > { %v1062_v47 = vpop.permute.xlu0 %1061  ;;  %v1620_v20 = vpop.permute.xlu1 %1619 }
 0x13f   : > { %1130 = vst.msk [vmem:[#allocation2 + $0xe0] sm:$0xf] %vm1101_vm14, %v1062_v47 }
 0x140   : > { %1687 = vst.msk [vmem:[#allocation2 + $0xe8] sm:$0xf] %vm1657_vm15, %v1620_v20  ;;  %2902 = vmatpush3.bf16.msra.mxu1 %v2991_v12 }
 0x141   : > { %2903 = vmatprep.subr.bf16.mxu1 %v3006_v30 }
 0x142   : > { %v1594_v4 = vpop.permute.xlu0 %1593 }
 0x143   : > { %1674 = vst.msk [vmem:[#allocation2 + $0x80] sm:$0xf] %vm1657_vm15, %v1594_v4  ;;  %v1958_v2 = vld [vmem:[#allocation2 + $0x88] sm:$0xff] }
 0x144   : > { %v752_v33 = vpop.permute.xlu1 %751 }
 0x145   : > { %817 = vst.msk [vmem:[#allocation2 + $0xf8] sm:$0xf] %vm785_vm13, %v752_v33 }
 0x146   : > { %v1618_v40 = vpop.permute.xlu0 %1617 }
 0x147   : > { %1686 = vst.msk [vmem:[#allocation2 + $0xe0] sm:$0xf] %vm1657_vm15, %v1618_v40  ;;  %v1970_v56 = vld [vmem:[#allocation2 + $0xe8] sm:$0xff] }
 0x149   : > { %v1068_v55 = vpop.permute.xlu1 %1067 }
 0x14a   : > { %v750_v44 = vpop.permute.xlu0 %749  ;;  %v1957_v19 = vld [vmem:[#allocation2 + $0x80] sm:$0xff]  ;;  %1133 = vst.msk [vmem:[#allocation2 + $0xf8] sm:$0xf] %vm1101_vm14, %v1068_v55 }
 0x14b   : > { %816 = vst.msk [vmem:[#allocation2 + $0xf0] sm:$0xf] %vm785_vm13, %v750_v44  ;;  %v2845_v49 = vcombine.low %v1957_v19, %v1958_v2 }
 0x14d   : > { %2343 = vmatmul.mubr.bf16.gmra.mxu0 %v2845_v49  ;;  %v1624_v52 = vpop.permute.xlu1 %1623 }
 0x14e   : > { %v1066_v59 = vpop.permute.xlu0 %1065  ;;  %v1969_v32 = vld [vmem:[#allocation2 + $0xe0] sm:$0xff]  ;;  %1689 = vst.msk [vmem:[#allocation2 + $0xf8] sm:$0xf] %vm1657_vm15, %v1624_v52 }
 0x14f   : > { %1132 = vst.msk [vmem:[#allocation2 + $0xf0] sm:$0xf] %vm1101_vm14, %v1066_v59  ;;  %v2857_v48 = vcombine.low %v1969_v32, %v1970_v56 }
 0x151   : > { %2391 = vmatmul.mubr.bf16.gmra.mxu1 %v2857_v48 }
 0x152   : > { %v1622_v60 = vpop.permute.xlu0 %1621  ;;  %2886 = vmatprep.mubr.msk.bf16.mxu1 %vm2197_vm0, %v2987_v41 }
 0x153   : > { %1688 = vst.msk [vmem:[#allocation2 + $0xf0] sm:$0xf] %vm1657_vm15, %v1622_v60 }
 0x15a   : > { %v2989_v22 = vld [vmem:[#allocation2 + $0xf0] ss:$8 sps:$4 sm:$0xff]  }
 0x15b   : > { %2399 = vmatmul.mubr.bf16.gmra.mxu1 %v2989_v22 }
 0x15c   : > { %2905 = vmatprep.mubr.msk.bf16.mxu1 %vm3007_vm6, %v3006_v30 }
 0x160   : > { %v2280_v42 = vpop.f32.mrf.mxu0 }
 0x161   : > { %v2414_v21 = vadd.f32 %v4490_v11, %v2280_v42 }
 0x162   : > { %v2282_v7 = vpop.f32.mrf.mxu0 }
 0x163   : > { %v2446_v29 = vmax.f32 %v2414_v21, 0.0 }
 0x164   : > { %v2283_v0 = vpop.f32.mrf.mxu0 }
 0x165   : > { %v2415_v25 = vadd.f32 %v4490_v11, %v2283_v0  ;;  %v2534_v23 = vsel %vm2533_vm3, %v2446_v29, -inf }
 0x166   : > { %v2285_v18 = vpop.f32.mrf.mxu0 }
 0x167   : > { %v2447_v17 = vmax.f32 %v2415_v25, 0.0 }
 0x169   : > { %v2535_v5 = vsel %vm2533_vm3, %v2447_v17, -inf }
 0x16a   : > { %v2288_v54 = vpop.f32.mrf.mxu0  ;;  %v2536_v31 = vmax.f32 %v2534_v23, %v2535_v5 }
 0x16b   : > { %v2416_v14 = vadd.f32 %v4490_v11, %v2288_v54 }
 0x16c   : > { %v2290_v9 = vpop.f32.mrf.mxu0 }
 0x16d   : > { %v2448_v27 = vmax.f32 %v2416_v14, 0.0  ;;  %v2992_v9 = vld [vmem:[%s4590_s3] sm:$0xff]  }
 0x16e   : > { %v2291_v43 = vpop.f32.mrf.mxu0  ;;  %2904 = vmatpush3.bf16.msra.mxu1 %v2992_v9 }
 0x16f   : > { %v2503_v36 = vsel %vm4497_vm4, %v2448_v27, -inf }
 0x170   : > { %v2537_v16 = vsel %vm2533_vm3, %v2503_v36, -inf  ;;  %v2293_v3 = vpop.f32.mrf.mxu0 }
 0x171   : > { %v2538_v6 = vmax.f32 %v2536_v31, %v2537_v16 }
 0x173   : > { %v2541_v8 = vrot.slane %v2538_v6, 4 }
 0x175   : > { %v2542_v47 = vmax.f32 %v2538_v6, %v2541_v8 }
 0x177   : > { %v2543_v40 = vrot.slane %v2542_v47, 2 }
 0x179   : > { %v2544_v56 = vmax.f32 %v2542_v47, %v2543_v40 }
 0x17b   : > { %v2296_v10 = vpop.f32.mrf.mxu0  ;;  %v2545_v48 = vrot.slane %v2544_v56, 1 }
 0x17c   : > { %v2418_v53 = vadd.f32 %v4490_v11, %v2296_v10 }
 0x17d   : > { %v2298_v34 = vpop.f32.mrf.mxu0  ;;  %v2546_v22 = vmax.f32 %v2544_v56, %v2545_v48 }
 0x17e   : > { %v2450_v1 = vmax.f32 %v2418_v53, 0.0 }
 0x17f   : > { %v2299_v28 = vpop.f32.mrf.mxu0  ;;  %v2638_v42 = vpack.c.bf16 %v2546_v22, %v2546_v22 }
 0x180   : > { %v2419_v63 = vadd.f32 %v4490_v11, %v2299_v28  ;;  %v2547_v13 = vsel %vm2533_vm3, %v2450_v1, -inf }
 0x181   : > { %v2301_v15 = vpop.f32.mrf.mxu0  ;;  %v2667_v50 = vunpack.c.l.b16 %v2638_v42 }
 0x182   : > { %v2451_v37 = vmax.f32 %v2419_v63, 0.0 }
 0x184   : > { %v2548_v24 = vsel %vm2533_vm3, %v2451_v37, -inf }
 0x185   : > { %v2549_v38 = vmax.f32 %v2547_v13, %v2548_v24 }
 0x196   : > { %v2304_v62 = vpop.f32.mrf.mxu0 }
 0x197   : > { %v2420_v4 = vadd.f32 %v4490_v11, %v2304_v62 }
 0x198   : > { %v2306_v20 = vpop.f32.mrf.mxu0 }
 0x199   : > { %v2452_v33 = vmax.f32 %v2420_v4, 0.0  ;;  %v4512_v44 = vpop.f32.mrf.mxu1 }
 0x19a   : > { %v2307_v2 = vpop.f32.mrf.mxu0 }
 0x19b   : > { %v2507_v19 = vsel %vm4497_vm4, %v2452_v33, -inf  ;;  %v2354_v49 = vpop.f32.mrf.mxu1 }
 0x19c   : > { %v2550_v39 = vsel %vm2533_vm3, %v2507_v19, -inf  ;;  %v2309_v55 = vpop.f32.mrf.mxu0 }
 0x19d   : > { %v2551_v59 = vmax.f32 %v2549_v38, %v2550_v39  ;;  %v2355_v32 = vpop.f32.mrf.mxu1 }
 0x19f   : > { %v2554_v51 = vrot.slane %v2551_v59, 4  ;;  %v2357_v52 = vpop.f32.mrf.mxu1 }
 0x1a1   : > { %v2555_v60 = vmax.f32 %v2551_v59, %v2554_v51 }
 0x1a3   : > { %v2556_v41 = vrot.slane %v2555_v60, 2 }
 0x1a5   : > { %v2557_v35 = vmax.f32 %v2555_v60, %v2556_v41 }
 0x1a7   : > { %v2558_v58 = vrot.slane %v2557_v35, 1 }
 0x1a9   : > { %v2559_v21 = vmax.f32 %v2557_v35, %v2558_v58 }
 0x1ab   : > { %v2639_v7 = vpack.c.bf16 %v2559_v21, %v2559_v21 }
 0x1ad   : > { %v2668_v0 = vunpack.c.l.b16 %v2639_v7  ;;  %v2312_v26 = vpop.f32.mrf.mxu0 }
 0x1ae   : > { %v2422_v25 = vadd.f32 %v4490_v11, %v2312_v26 }
 0x1af   : > { %v2676_v29 = vsel %vm2675_vm5, %v2668_v0, %v2667_v50  ;;  %v2314_v18 = vpop.f32.mrf.mxu0 }
 0x1b0   : > { %v2454_v45 = vmax.f32 %v2422_v25, 0.0 }
 0x1b1   : > { %v2315_v57 = vpop.f32.mrf.mxu0  ;;  %v2360_v17 = vpop.f32.mrf.mxu1 }
 0x1b2   : > { %v2423_v54 = vadd.f32 %v4490_v11, %v2315_v57  ;;  %v2434_v23 = vadd.f32 %v4490_v11, %v2360_v17  ;;  %v2560_v43 = vsel %vm2533_vm3, %v2454_v45, -inf }
 0x1b3   : > { %v2317_v5 = vpop.f32.mrf.mxu0  ;;  %v2362_v14 = vpop.f32.mrf.mxu1 }
 0x1b4   : > { %v2455_v31 = vmax.f32 %v2423_v54, 0.0  ;;  %v2466_v16 = vmax.f32 %v2434_v23, 0.0 }
 0x1b5   : > { %v2363_v27 = vpop.f32.mrf.mxu1 }
 0x1b6   : > { %v2561_v36 = vsel %vm2533_vm3, %v2455_v31, -inf  ;;  %v2435_v3 = vadd.f32 %v4490_v11, %v2363_v27  ;;  %v2599_v34 = vsel %vm2533_vm3, %v2466_v16, -inf }
 0x1b7   : > { %v2562_v6 = vmax.f32 %v2560_v43, %v2561_v36  ;;  %v2365_v10 = vpop.f32.mrf.mxu1 }
 0x1b8   : > { %v2467_v53 = vmax.f32 %v2435_v3, 0.0 }
 0x1ba   : > { %v2600_v28 = vsel %vm2533_vm3, %v2467_v53, -inf }
 0x1bb   : > { %v2601_v1 = vmax.f32 %v2599_v34, %v2600_v28 }
 0x1c5   : > { %v2320_v63 = vpop.f32.mrf.mxu0 }
 0x1c6   : > { %v2424_v15 = vadd.f32 %v4490_v11, %v2320_v63 }
 0x1c7   : > { %v2322_v37 = vpop.f32.mrf.mxu0 }
 0x1c8   : > { %v2456_v13 = vmax.f32 %v2424_v15, 0.0  ;;  %v2432_v15 = vadd.f32 %v4490_v11, %v4512_v44 }
 0x1c9   : > { %v2323_v24 = vpop.f32.mrf.mxu0  ;;  %v2368_v38 = vpop.f32.mrf.mxu1 }
 0x1ca   : > { %v2511_v8 = vsel %vm4497_vm4, %v2456_v13, -inf  ;;  %v2436_v61 = vadd.f32 %v4490_v11, %v2368_v38 }
 0x1cb   : > { %v2563_v47 = vsel %vm2533_vm3, %v2511_v8, -inf  ;;  %v2325_v30 = vpop.f32.mrf.mxu0  ;;  %v2370_v62 = vpop.f32.mrf.mxu1 }
 0x1cc   : > { %v2564_v4 = vmax.f32 %v2562_v6, %v2563_v47  ;;  %v2468_v20 = vmax.f32 %v2436_v61, 0.0 }
 0x1cd   : > { %v2371_v40 = vpop.f32.mrf.mxu1 }
 0x1ce   : > { %v2567_v33 = vrot.slane %v2564_v4, 4  ;;  %v2523_v2 = vsel %vm4497_vm4, %v2468_v20, -inf }
 0x1cf   : > { %v2602_v19 = vsel %vm2533_vm3, %v2523_v2, -inf  ;;  %v2373_v39 = vpop.f32.mrf.mxu1 }
 0x1d0   : > { %v2568_v55 = vmax.f32 %v2564_v4, %v2567_v33  ;;  %v2603_v49 = vmax.f32 %v2601_v1, %v2602_v19  ;;  %v2464_v4 = vmax.f32 %v2432_v15, 0.0 }
 0x1d2   : > { %v2569_v56 = vrot.slane %v2568_v55, 2  ;;  %v2606_v24 = vrot.slane %v2603_v49, 4 }
 0x1d4   : > { %v2570_v59 = vmax.f32 %v2568_v55, %v2569_v56  ;;  %v2607_v44 = vmax.f32 %v2603_v49, %v2606_v24 }
 0x1d6   : > { %v2571_v32 = vrot.slane %v2570_v59, 1 }
 0x1d8   : > { %v2572_v51 = vmax.f32 %v2570_v59, %v2571_v32 }
 0x1da   : > { %v2640_v52 = vpack.c.bf16 %v2572_v51, %v2572_v51  ;;  %v2519_v51 = vsel %vm4497_vm4, %v2464_v4, -inf }
 0x1dc   : > { %v2669_v48 = vunpack.c.l.b16 %v2640_v52 }
 0x1dd   : > { %v2328_v60 = vpop.f32.mrf.mxu0 }
 0x1de   : > { %v4539_v41 = vsel %vm2677_vm7, %v2669_v48, %v2676_v29  ;;  %v2426_v17 = vadd.f32 %v4490_v11, %v2328_v60  ;;  %v2608_v48 = vrot.slane %v2607_v44, 2 }
 0x1df   : > { %v2330_v22 = vpop.f32.mrf.mxu0 }
 0x1e0   : > { %v2458_v14 = vmax.f32 %v2426_v17, 0.0 }
 0x1e1   : > { %v2331_v35 = vpop.f32.mrf.mxu0  ;;  %v2376_v58 = vpop.f32.mrf.mxu1 }
 0x1e2   : > { %v2427_v25 = vadd.f32 %v4490_v11, %v2331_v35  ;;  %v2573_v43 = vsel %vm2533_vm3, %v2458_v14, -inf  ;;  %v2438_v53 = vadd.f32 %v4490_v11, %v2376_v58 }
 0x1e3   : > { %v2333_v42 = vpop.f32.mrf.mxu0  ;;  %v2378_v21 = vpop.f32.mrf.mxu1 }
 0x1e4   : > { %v2459_v23 = vmax.f32 %v2427_v25, 0.0  ;;  %v2470_v63 = vmax.f32 %v2438_v53, 0.0 }
 0x1e5   : > { %v2379_v7 = vpop.f32.mrf.mxu1 }
 0x1e6   : > { %v2574_v27 = vsel %vm2533_vm3, %v2459_v23, -inf  ;;  %v2439_v6 = vadd.f32 %v4490_v11, %v2379_v7  ;;  %v2612_v30 = vsel %vm2533_vm3, %v2470_v63, -inf  ;;  %v2589_v7 = vsel %vm2533_vm3, %v2519_v51, -inf }
 0x1e7   : > { %v2381_v50 = vpop.f32.mrf.mxu1  ;;  %v2575_v16 = vmax.f32 %v2573_v43, %v2574_v27 }
 0x1e8   : > { %v2471_v28 = vmax.f32 %v2439_v6, 0.0 }
 0x1ea   : > { %v2613_v38 = vsel %vm2533_vm3, %v2471_v28, -inf }
 0x1eb   : > { %v2614_v20 = vmax.f32 %v2612_v30, %v2613_v38 }
 0x1f5   : > { %v2336_v0 = vpop.f32.mrf.mxu0 }
 0x1f6   : > { %v2428_v26 = vadd.f32 %v4490_v11, %v2336_v0 }
 0x1f7   : > { %v2338_v12 = vpop.f32.mrf.mxu0 }
 0x1f8   : > { %v2460_v54 = vmax.f32 %v2428_v26, 0.0  ;;  %v2609_v12 = vmax.f32 %v2607_v44, %v2608_v48 }
 0x1f9   : > { %v2339_v18 = vpop.f32.mrf.mxu0  ;;  %v2384_v57 = vpop.f32.mrf.mxu1 }
 0x1fa   : > { %v2515_v9 = vsel %vm4497_vm4, %v2460_v54, -inf  ;;  %v2440_v3 = vadd.f32 %v4490_v11, %v2384_v57  ;;  %v2610_v54 = vrot.slane %v2609_v12, 1 }
 0x1fb   : > { %v2341_v45 = vpop.f32.mrf.mxu0  ;;  %v2386_v29 = vpop.f32.mrf.mxu1  ;;  %v2576_v36 = vsel %vm2533_vm3, %v2515_v9, -inf }
 0x1fc   : > { %v2577_v10 = vmax.f32 %v2575_v16, %v2576_v36  ;;  %v2472_v34 = vmax.f32 %v2440_v3, 0.0  ;;  %v2611_v6 = vmax.f32 %v2609_v12, %v2610_v54 }
 0x1fd   : > { %v2387_v5 = vpop.f32.mrf.mxu1 }
 0x1fe   : > { %v2580_v1 = vrot.slane %v2577_v10, 4  ;;  %v2527_v37 = vsel %vm4497_vm4, %v2472_v34, -inf }
 0x1ff   : > { %v2389_v31 = vpop.f32.mrf.mxu1  ;;  %v2615_v62 = vsel %vm2533_vm3, %v2527_v37, -inf }
 0x200   : > { %v2581_v8 = vmax.f32 %v2577_v10, %v2580_v1  ;;  %v2616_v55 = vmax.f32 %v2614_v20, %v2615_v62 }
 0x202   : > { %v2582_v2 = vrot.slane %v2581_v8, 2  ;;  %v2619_v58 = vrot.slane %v2616_v55, 4 }
 0x204   : > { %v2583_v60 = vmax.f32 %v2581_v8, %v2582_v2  ;;  %v2620_v25 = vmax.f32 %v2616_v55, %v2619_v58 }
 0x206   : > { %v2584_v26 = vrot.slane %v2583_v60, 1  ;;  %v2621_v14 = vrot.slane %v2620_v25, 2 }
 0x208   : > { %v2585_v23 = vmax.f32 %v2583_v60, %v2584_v26  ;;  %v2622_v28 = vmax.f32 %v2620_v25, %v2621_v14 }
 0x20a   : > { %v2641_v10 = vpack.c.bf16 %v2585_v23, %v2585_v23  ;;  %v2623_v8 = vrot.slane %v2622_v28, 1 }
 0x20c   : > { %v2670_v24 = vunpack.c.l.b16 %v2641_v10  ;;  %v2624_v20 = vmax.f32 %v2622_v28, %v2623_v8 }
 0x20d   : > { %v2344_v13 = vpop.f32.mrf.mxu0 }
 0x20e   : > { %v2430_v61 = vadd.f32 %v4490_v11, %v2344_v13  ;;  %v2643_v13 = vpack.c.bf16 %v2611_v6, %v2611_v6  ;;  %v2680_v46 = vsel %vm2679_vm8, %v2670_v24, %v4539_v41  ;;  %v2888_v41 = vld [vmem:[%s4591_s4] ss:$0 sm:$0xff] }
 0x20f   : > { %v2346_v47 = vpop.f32.mrf.mxu0 }
 0x210   : > { %v2462_v19 = vmax.f32 %v2430_v61, 0.0  ;;  %v2672_v62 = vunpack.c.l.b16 %v2643_v13 }
 0x211   : > { %v2347_v40 = vpop.f32.mrf.mxu0  ;;  %v2392_v33 = vpop.f32.mrf.mxu1 }
 0x212   : > { %v2431_v39 = vadd.f32 %v4490_v11, %v2347_v40  ;;  %v2586_v22 = vsel %vm2533_vm3, %v2462_v19, -inf  ;;  %v2442_v0 = vadd.f32 %v4490_v11, %v2392_v33  ;;  %v2644_v19 = vpack.c.bf16 %v2624_v20, %v2624_v20 }
 0x213   : > { %v2349_v56 = vpop.f32.mrf.mxu0  ;;  %v2394_v59 = vpop.f32.mrf.mxu1 }
 0x214   : > { %v2463_v32 = vmax.f32 %v2431_v39, 0.0  ;;  %v2474_v45 = vmax.f32 %v2442_v0, 0.0  ;;  %v2673_v56 = vunpack.c.l.b16 %v2644_v19 }
 0x215   : > { %v2395_v52 = vpop.f32.mrf.mxu1 }
 0x216   : > { %v2587_v35 = vsel %vm2533_vm3, %v2463_v32, -inf  ;;  %v2443_v42 = vadd.f32 %v4490_v11, %v2395_v52  ;;  %v2625_v16 = vsel %vm2533_vm3, %v2474_v45, -inf }
 0x217   : > { %v2588_v49 = vmax.f32 %v2586_v22, %v2587_v35  ;;  %v2397_v21 = vpop.f32.mrf.mxu1 }
 0x218   : > { %v2475_v57 = vmax.f32 %v2443_v42, 0.0 }
 0x219   : > { %v2590_v50 = vmax.f32 %v2588_v49, %v2589_v7 }
 0x21a   : > { %v2626_v9 = vsel %vm2533_vm3, %v2475_v57, -inf }
 0x21b   : > { %v2593_v18 = vrot.slane %v2590_v50, 4  ;;  %v2400_v29 = vpop.f32.mrf.mxu1  ;;  %v2627_v53 = vmax.f32 %v2625_v16, %v2626_v9 }
 0x21c   : > { %v2444_v5 = vadd.f32 %v4490_v11, %v2400_v29 }
 0x21d   : > { %v2594_v17 = vmax.f32 %v2590_v50, %v2593_v18  ;;  %v2402_v27 = vpop.f32.mrf.mxu1 }
 0x21e   : > { %v2476_v43 = vmax.f32 %v2444_v5, 0.0 }
 0x21f   : > { %v2595_v31 = vrot.slane %v2594_v17, 2  ;;  %v2403_v3 = vpop.f32.mrf.mxu1 }
 0x220   : > { %v2531_v34 = vsel %vm4497_vm4, %v2476_v43, -inf }
 0x221   : > { %v2596_v36 = vmax.f32 %v2594_v17, %v2595_v31  ;;  %v2628_v11 = vsel %vm2533_vm3, %v2531_v34, -inf  ;;  %v2405_v63 = vpop.f32.mrf.mxu1 }
 0x222   : > { %v2629_v15 = vmax.f32 %v2627_v53, %v2628_v11 }
 0x223   : > { %v2597_v1 = vrot.slane %v2596_v36, 1 }
 0x224   : > { %v2632_v38 = vrot.slane %v2629_v15, 4 }
 0x225   : > { %v2598_v37 = vmax.f32 %v2596_v36, %v2597_v1 }
 0x226   : > { %v2633_v47 = vmax.f32 %v2629_v15, %v2632_v38 }
 0x227   : > { %v2642_v61 = vpack.c.bf16 %v2598_v37, %v2598_v37 }
 0x228   : > { %v2634_v4 = vrot.slane %v2633_v47, 2 }
 0x229   : > { %v2671_v30 = vunpack.c.l.b16 %v2642_v61 }
 0x22a   : > { %v2635_v44 = vmax.f32 %v2633_v47, %v2634_v4 }
 0x22b   : > { %v2682_v40 = vsel %vm2681_vm9, %v2671_v30, %v2680_v46 }
 0x22c   : > { %v2684_v33 = vsel %vm2683_vm10, %v2672_v62, %v2682_v40  ;;  %v2636_v2 = vrot.slane %v2635_v44, 1 }
 0x22d   : > { %v2686_v32 = vsel %vm2685_vm11, %v2673_v56, %v2684_v33 }
 0x22e   : > { %v2637_v39 = vmax.f32 %v2635_v44, %v2636_v2 }
 0x230   : > { %v2645_v55 = vpack.c.bf16 %v2637_v39, %v2637_v39 }
 0x232   : > { %v2674_v59 = vunpack.c.l.b16 %v2645_v55 }
 0x234   : > { %v2688_v51 = vsel %vm2687_vm12, %v2674_v59, %v2686_v32 }
 0x235   : > { %v2689_v52 = vpack.c.b16 %v2688_v51, %v2688_v51 }
 0x237   : > { %2906 = vmatmul.mubr.msk.bf16.vlgmr.msra.gmra.mxu1 %vm2533_vm3, %v2689_v52 }
 0x2f7   : > { %v2745_v48 = vpop.f32.mrf.mxu1 }
 0x2f8   : > { %v2746_v60 = vadd.f32 %v2888_v41, %v2745_v48 }
 0x2f9   : > { %v2907_v22 = vpop.f32.mrf.mxu1 }
 0x2fa   : > { %2751 = vst [vmem:[%s227_s13] sm:$0xff] %v2746_v60 }
 0x2fb   : > { %v2748_v35 = vpop.f32.mrf.mxu1 }
 0x2fd   : > { %v2908_v58 = vpop.f32.mrf.mxu1 }
 0x2fe PF: > { %s15_s18 = sadd.s32 1, %s2999_s18  }
 0x2ff   : > { %p12_p5 = scmp.ge.s32.totalorder %s15_s18, 4  }
 0x301   :  { %14 = sbr.rel (!%p12_p5) target bundleno = 1 (0x1), region = 70 }

</bundles_post_ra>
